<compile_context>
chip_gen: v5e
topology: v5e:2x2
jax: 0.10.0
libtpu: 0.0.40
codegen_flags: <defaults>
</compile_context>

<pallas_src>
import jax
import jax.numpy as jnp
from jax import lax
from jax.experimental import pallas as pl
from jax.experimental.pallas import tpu as pltpu

IN_F = 166
HID = 400
K = 101
CONV_OUT = HID + K - 1        # 500
OUT_F = 163
BN_EPS = 1e-5

# Band split of the (400, 500) transposed-conv matrix Wtc[i, t] = w[t - i]:
#   output cols [0,256)   only need input rows [0,256)
#   output cols [256,500) only need input rows [156,400)  (rows [128,156) are
#   zero there but are kept so the slice of h starts at a 128-aligned lane).
SPLIT_OUT = 256               # conv output column split
ROWS_A = 256                  # rows feeding the left block
ROW_B_START = 128             # lane-aligned start of rows feeding the right block
ROWS_B = HID - ROW_B_START    # 272
COLS_B = CONV_OUT - SPLIT_OUT # 244

MAX_TM = 512
VMEM_LIMIT = 32 * 1024 * 1024


def _round_up(v, m):
    return (v + m - 1) // m * m


# ---------------------------------------------------------------------------
# Fused kernel: phase 0 = BN batch statistics, phase 1 = full forward
# ---------------------------------------------------------------------------
def _fused_kernel(n_ref, x_ref, w1_ref, b1_ref, wtca_ref, wtcb_ref,
                  btca_ref, btcb_ref, w2a_ref, w2b_ref, b2_ref,
                  o_ref, stat_ref):
    p = pl.program_id(0)          # 0: statistics, 1: forward
    i = pl.program_id(1)          # batch tile
    tm = x_ref.shape[0]

    # Shared by both phases: h = relu(relu(x) @ W1 + b1), f32 accumulation.
    xr = jnp.maximum(x_ref[...], 0.0).astype(jnp.bfloat16)
    h = jnp.dot(xr, w1_ref[...], preferred_element_type=jnp.float32) + b1_ref[...]
    h = jnp.maximum(h, 0.0)

    @pl.when(p == 0)
    def _stats_phase():
        @pl.when(i == 0)
        def _init():
            stat_ref[0] = jnp.float32(0.0)
            stat_ref[1] = jnp.float32(0.0)

        # Mask batch-padding rows (global row index >= true N).
        row = lax.broadcasted_iota(jnp.int32, (tm, 1), 0) + i * tm
        hm = jnp.where(row < n_ref[0], h, 0.0)
        stat_ref[0] = stat_ref[0] + jnp.sum(hm)
        stat_ref[1] = stat_ref[1] + jnp.sum(hm * hm)

    @pl.when(p == 1)
    def _forward_phase():
        # Finalize mean / scale on (1,1) vectors (VPU div + EUP rsqrt).
        n_f = jnp.full((1, 1), n_ref[0], jnp.float32)
        s1 = jnp.full((1, 1), stat_ref[0], jnp.float32)
        s2 = jnp.full((1, 1), stat_ref[1], jnp.float32)
        cnt = n_f * jnp.float32(HID)
        mean = s1 / cnt
        var = jnp.maximum(s2 / cnt - mean * mean, 0.0)   # biased var (PyTorch BN)
        scale = lax.rsqrt(var + BN_EPS)

        mean_row = jnp.broadcast_to(mean, (1, HID))
        scale_row = jnp.broadcast_to(scale, (1, HID))
        hn = ((h - mean_row) * scale_row).astype(jnp.bfloat16)

        # Banded ConvTranspose1d as two dense matmuls + bias.
        cl = jnp.dot(hn[:, :ROWS_A], wtca_ref[...],
                     preferred_element_type=jnp.float32) + btca_ref[...]
        cr = jnp.dot(hn[:, ROW_B_START:], wtcb_ref[...],
                     preferred_element_type=jnp.float32) + btcb_ref[...]
        tl = jnp.maximum(cl, 0.0).astype(jnp.bfloat16)
        tr = jnp.maximum(cr, 0.0).astype(jnp.bfloat16)

        # Final Linear(500 -> 163), split to match the conv column split.
        o_ref[...] = (jnp.dot(tl, w2a_ref[...], preferred_element_type=jnp.float32)
                      + jnp.dot(tr, w2b_ref[...], preferred_element_type=jnp.float32)
                      + b2_ref[...])


# ---------------------------------------------------------------------------
# Parameter preparation (done once, not per forward call)
# ---------------------------------------------------------------------------
def prepare_params(params):
    w1, b1, w_tc, b_tc, w2, b2 = params
    i = jnp.arange(HID)[:, None]
    j = jnp.arange(CONV_OUT)[None, :]
    d = j - i
    wtc_full = jnp.where((d >= 0) & (d < K),
                         w_tc[jnp.clip(d, 0, K - 1)], 0.0).astype(jnp.float32)
    return dict(
        w1=w1.astype(jnp.bfloat16),
        b1=b1.reshape(1, HID).astype(jnp.float32),
        wtca=wtc_full[:ROWS_A, :SPLIT_OUT].astype(jnp.bfloat16),        # (256, 256)
        wtcb=wtc_full[ROW_B_START:, SPLIT_OUT:].astype(jnp.bfloat16),   # (272, 244)
        btca=jnp.full((1, SPLIT_OUT), b_tc[0], jnp.float32),
        btcb=jnp.full((1, COLS_B), b_tc[0], jnp.float32),
        w2a=w2[:SPLIT_OUT, :].astype(jnp.bfloat16),                     # (256, 163)
        w2b=w2[SPLIT_OUT:, :].astype(jnp.bfloat16),                     # (244, 163)
        b2=b2.reshape(1, OUT_F).astype(jnp.float32),
    )


def neural_network2_forward(x_ncl, prep):
    """x_ncl: (N, 1, 166) float32 -> (N, 1, 163) float32."""
    N = x_ncl.shape[0]
    x2d = x_ncl.reshape(N, IN_F).astype(jnp.float32)

    TM = min(MAX_TM, _round_up(N, 8))
    Np = _round_up(N, TM)
    nt = Np // TM
    if Np != N:
        x2d = jnp.pad(x2d, ((0, Np - N), (0, 0)))
    n_actual = jnp.array([N], dtype=jnp.int32)

    out = pl.pallas_call(
        _fused_kernel,
        out_shape=jax.ShapeDtypeStruct((Np, OUT_F), jnp.float32),
        grid_spec=pltpu.PrefetchScalarGridSpec(
            num_scalar_prefetch=1,
            grid=(2, nt),                     # (phase, batch tile)
            in_specs=[
                pl.BlockSpec((TM, IN_F), lambda p, i, n: (i, 0)),
                pl.BlockSpec((IN_F, HID), lambda p, i, n: (0, 0)),
                pl.BlockSpec((1, HID), lambda p, i, n: (0, 0)),
                pl.BlockSpec((ROWS_A, SPLIT_OUT), lambda p, i, n: (0, 0)),
                pl.BlockSpec((ROWS_B, COLS_B), lambda p, i, n: (0, 0)),
                pl.BlockSpec((1, SPLIT_OUT), lambda p, i, n: (0, 0)),
                pl.BlockSpec((1, COLS_B), lambda p, i, n: (0, 0)),
                pl.BlockSpec((SPLIT_OUT, OUT_F), lambda p, i, n: (0, 0)),
                pl.BlockSpec((COLS_B, OUT_F), lambda p, i, n: (0, 0)),
                pl.BlockSpec((1, OUT_F), lambda p, i, n: (0, 0)),
            ],
            # Phase 0 keeps the output block index pinned at 0 (no writeback,
            # no revisiting); phase 1 walks the batch tiles.
            out_specs=pl.BlockSpec((TM, OUT_F), lambda p, i, n: (i * p, 0)),
            scratch_shapes=[pltpu.SMEM((2,), jnp.float32)],
        ),
        compiler_params=pltpu.CompilerParams(
            # Stats must be global over the batch -> sequential grid.
            dimension_semantics=("arbitrary", "arbitrary"),
            vmem_limit_bytes=VMEM_LIMIT,
        ),
    )(n_actual, x2d, prep["w1"], prep["b1"], prep["wtca"], prep["wtcb"],
      prep["btca"], prep["btcb"], prep["w2a"], prep["w2b"], prep["b2"])

    return out[:N].reshape(N, 1, OUT_F)


# ---------------------------------------------------------------------------
# Deterministic synthetic parameters + pure-JAX reference
# ---------------------------------------------------------------------------
def init_params(key):
    k1, k2, k3, k4, k5, k6 = jax.random.split(key, 6)
    # Weights stored already transposed for x @ W.
    w1 = jax.random.normal(k1, (IN_F, HID), jnp.float32) / jnp.sqrt(float(IN_F))
    b1 = jax.random.normal(k2, (HID,), jnp.float32) * 0.01
    w_tc = jax.random.normal(k3, (K,), jnp.float32) * 0.1    # ConvT weight (1,1,101) squeezed
    b_tc = jax.random.normal(k4, (1,), jnp.float32) * 0.01   # ConvT bias (1,)
    w2 = jax.random.normal(k5, (CONV_OUT, OUT_F), jnp.float32) / jnp.sqrt(float(CONV_OUT))
    b2 = jax.random.normal(k6, (OUT_F,), jnp.float32) * 0.01
    return (w1, b1, w_tc, b_tc, w2, b2)


def reference_forward(x_ncl, params):
    """Plain-JAX f32 reference of the PyTorch forward (training-mode BN stats)."""
    w1, b1, w_tc, b_tc, w2, b2 = params
    x = jnp.maximum(x_ncl.reshape(-1, IN_F).astype(jnp.float32), 0.0)
    h = jnp.maximum(x @ w1 + b1, 0.0)
    mean = jnp.mean(h)
    var = jnp.mean(jnp.square(h - mean))
    hn = (h - mean) * lax.rsqrt(var + BN_EPS)
    i = jnp.arange(HID)[:, None]
    j = jnp.arange(CONV_OUT)[None, :]
    d = j - i
    wtc = jnp.where((d >= 0) & (d < K), w_tc[jnp.clip(d, 0, K - 1)], 0.0)
    t = jnp.maximum(hn @ wtc + b_tc, 0.0)
    o = t @ w2 + b2
    return o.reshape(-1, 1, OUT_F)


if __name__ == "__main__":
    key = jax.random.PRNGKey(0)
    k_param, k_x = jax.random.split(key)
    params = init_params(k_param)
    prep = prepare_params(params)

    N = 16
    x = jax.random.normal(k_x, (N, 1, IN_F), jnp.float32)

    y = neural_network2_forward(x, prep)
    y = jax.block_until_ready(y)

    assert y.shape == (N, 1, OUT_F), y.shape
    assert bool(jnp.all(jnp.isfinite(y)))
    y_ref = reference_forward(x, params)
    max_err = float(jnp.max(jnp.abs(y - y_ref)))
    assert max_err < 0.25, max_err  # bf16 matmuls, f32 accumulation
    print("KERNEL_OK")
</pallas_src>

<mosaic_0001>
module attributes {stable_mosaic.version = 11 : i64} {
  func.func @_fused_kernel(%arg0: i32, %arg1: i32, %arg2: memref<1xi32, #tpu.memory_space<smem>>, %arg3: memref<16x166xf32, #tpu.memory_space<vmem>>, %arg4: memref<166x400xbf16, #tpu.memory_space<vmem>>, %arg5: memref<1x400xf32, #tpu.memory_space<vmem>>, %arg6: memref<256x256xbf16, #tpu.memory_space<vmem>>, %arg7: memref<272x244xbf16, #tpu.memory_space<vmem>>, %arg8: memref<1x256xf32, #tpu.memory_space<vmem>>, %arg9: memref<1x244xf32, #tpu.memory_space<vmem>>, %arg10: memref<256x163xbf16, #tpu.memory_space<vmem>>, %arg11: memref<244x163xbf16, #tpu.memory_space<vmem>>, %arg12: memref<1x163xf32, #tpu.memory_space<vmem>>, %arg13: memref<16x163xf32, #tpu.memory_space<vmem>>, %arg14: memref<2xf32, #tpu.memory_space<smem>>) attributes {dimension_semantics = [#tpu.dimension_semantics<arbitrary>, #tpu.dimension_semantics<arbitrary>], iteration_bounds = array<i64: 2, 1>, scalar_prefetch = 1 : i64, scratch_operands = 1 : i64, tpu.core_type = #tpu.core_type<tc>, window_params = [{transform_indices = @transform_0, window_bounds = array<i64: 16, 166>}, {pipeline_mode = #tpu.pipeline_mode<synchronous>, transform_indices = @transform_1, window_bounds = array<i64: 166, 400>}, {pipeline_mode = #tpu.pipeline_mode<synchronous>, transform_indices = @transform_2, window_bounds = array<i64: 1, 400>}, {pipeline_mode = #tpu.pipeline_mode<synchronous>, transform_indices = @transform_3, window_bounds = array<i64: 256, 256>}, {pipeline_mode = #tpu.pipeline_mode<synchronous>, transform_indices = @transform_4, window_bounds = array<i64: 272, 244>}, {pipeline_mode = #tpu.pipeline_mode<synchronous>, transform_indices = @transform_5, window_bounds = array<i64: 1, 256>}, {pipeline_mode = #tpu.pipeline_mode<synchronous>, transform_indices = @transform_6, window_bounds = array<i64: 1, 244>}, {pipeline_mode = #tpu.pipeline_mode<synchronous>, transform_indices = @transform_7, window_bounds = array<i64: 256, 163>}, {pipeline_mode = #tpu.pipeline_mode<synchronous>, transform_indices = @transform_8, window_bounds = array<i64: 244, 163>}, {pipeline_mode = #tpu.pipeline_mode<synchronous>, transform_indices = @transform_9, window_bounds = array<i64: 1, 163>}, {transform_indices = @transform_10, window_bounds = array<i64: 16, 163>}]} {
    %c0 = arith.constant 0 : index
    %c0_0 = arith.constant 0 : index
    %0 = vector.load %arg3[%c0, %c0_0] : memref<16x166xf32, #tpu.memory_space<vmem>>, vector<16x166xf32>
    %cst = arith.constant 0.000000e+00 : f32
    %1 = vector.broadcast %cst : f32 to vector<16x166xf32>
    %2 = arith.maximumf %0, %1 : vector<16x166xf32>
    %3 = arith.truncf %2 : vector<16x166xf32> to vector<16x166xbf16>
    %c0_1 = arith.constant 0 : index
    %c0_2 = arith.constant 0 : index
    %4 = vector.load %arg4[%c0_1, %c0_2] : memref<166x400xbf16, #tpu.memory_space<vmem>>, vector<166x400xbf16>
    %cst_3 = arith.constant dense<0.000000e+00> : vector<16x400xf32>
    %5 = tpu.matmul %3, %4, %cst_3 {dimension_numbers = #tpu.dot_dimension_numbers<[1], [0], [0], [1], [0, 0, 1, 1], [], []>} : vector<16x166xbf16>, vector<166x400xbf16>, vector<16x400xf32> -> vector<16x400xf32>
    %c0_4 = arith.constant 0 : index
    %c0_5 = arith.constant 0 : index
    %6 = vector.load %arg5[%c0_4, %c0_5] : memref<1x400xf32, #tpu.memory_space<vmem>>, vector<1x400xf32>
    %7 = vector.broadcast %6 : vector<1x400xf32> to vector<16x400xf32>
    %8 = arith.addf %5, %7 : vector<16x400xf32>
    %cst_6 = arith.constant 0.000000e+00 : f32
    %9 = vector.broadcast %cst_6 : f32 to vector<16x400xf32>
    %10 = arith.maximumf %8, %9 : vector<16x400xf32>
    %c0_i32 = arith.constant 0 : i32
    %11 = arith.cmpi eq, %arg0, %c0_i32 : i32
    %12 = arith.extui %11 : i1 to i32
    %c0_i32_7 = arith.constant 0 : i32
    %13 = arith.cmpi ne, %12, %c0_i32_7 : i32
    scf.if %13 {
      %c0_i32_9 = arith.constant 0 : i32
      %17 = arith.cmpi eq, %arg1, %c0_i32_9 : i32
      %18 = arith.extui %17 : i1 to i32
      %c0_i32_10 = arith.constant 0 : i32
      %19 = arith.cmpi ne, %18, %c0_i32_10 : i32
      scf.if %19 {
        %cst_18 = arith.constant 0.000000e+00 : f32
        %c0_19 = arith.constant 0 : index
        %46 = memref.load %arg14[%c0_19] : memref<2xf32, #tpu.memory_space<smem>>
        memref.store %cst_18, %arg14[%c0_19] : memref<2xf32, #tpu.memory_space<smem>>
        %cst_20 = arith.constant 0.000000e+00 : f32
        %c1_21 = arith.constant 1 : index
        %47 = memref.load %arg14[%c1_21] : memref<2xf32, #tpu.memory_space<smem>>
        memref.store %cst_20, %arg14[%c1_21] : memref<2xf32, #tpu.memory_space<smem>>
      } else {
      }
      %20 = tpu.iota {dimensions = array<i32: 0>} : vector<16x1xi32>
      %c16_i32 = arith.constant 16 : i32
      %21 = arith.muli %arg1, %c16_i32 : i32
      %22 = vector.broadcast %21 : i32 to vector<16x1xi32>
      %23 = arith.addi %20, %22 : vector<16x1xi32>
      %c0_11 = arith.constant 0 : index
      %24 = memref.load %arg2[%c0_11] : memref<1xi32, #tpu.memory_space<smem>>
      %25 = vector.broadcast %24 : i32 to vector<16x1xi32>
      %26 = arith.cmpi slt, %23, %25 : vector<16x1xi32>
      %cst_12 = arith.constant 0.000000e+00 : f32
      %27 = vector.shape_cast %26 : vector<16x1xi1> to vector<16x1xi1>
      %28 = vector.broadcast %27 : vector<16x1xi1> to vector<16x400xi1>
      %29 = vector.broadcast %cst_12 : f32 to vector<16x400xf32>
      %30 = arith.select %28, %10, %29 : vector<16x400xi1>, vector<16x400xf32>
      %c0_13 = arith.constant 0 : index
      %31 = memref.load %arg14[%c0_13] : memref<2xf32, #tpu.memory_space<smem>>
      %32 = vector.shape_cast %30 : vector<16x400xf32> to vector<1x16x400xf32>
      %cst_14 = arith.constant dense<0.000000e+00> : vector<1xf32>
      %33 = vector.multi_reduction <add>, %32, %cst_14 [1, 2] : vector<1x16x400xf32> to vector<1xf32>
      %34 = vector.shape_cast %33 : vector<1xf32> to vector<1x1x1xf32>
      %35 = vector.extract %34[0, 0, 0] : f32 from vector<1x1x1xf32>
      %36 = arith.addf %31, %35 : f32
      %c0_15 = arith.constant 0 : index
      %37 = memref.load %arg14[%c0_15] : memref<2xf32, #tpu.memory_space<smem>>
      memref.store %36, %arg14[%c0_15] : memref<2xf32, #tpu.memory_space<smem>>
      %c1 = arith.constant 1 : index
      %38 = memref.load %arg14[%c1] : memref<2xf32, #tpu.memory_space<smem>>
      %39 = arith.mulf %30, %30 : vector<16x400xf32>
      %40 = vector.shape_cast %39 : vector<16x400xf32> to vector<1x16x400xf32>
      %cst_16 = arith.constant dense<0.000000e+00> : vector<1xf32>
      %41 = vector.multi_reduction <add>, %40, %cst_16 [1, 2] : vector<1x16x400xf32> to vector<1xf32>
      %42 = vector.shape_cast %41 : vector<1xf32> to vector<1x1x1xf32>
      %43 = vector.extract %42[0, 0, 0] : f32 from vector<1x1x1xf32>
      %44 = arith.addf %38, %43 : f32
      %c1_17 = arith.constant 1 : index
      %45 = memref.load %arg14[%c1_17] : memref<2xf32, #tpu.memory_space<smem>>
      memref.store %44, %arg14[%c1_17] : memref<2xf32, #tpu.memory_space<smem>>
    } else {
    }
    %c1_i32 = arith.constant 1 : i32
    %14 = arith.cmpi eq, %arg0, %c1_i32 : i32
    %15 = arith.extui %14 : i1 to i32
    %c0_i32_8 = arith.constant 0 : i32
    %16 = arith.cmpi ne, %15, %c0_i32_8 : i32
    scf.if %16 {
      %c0_9 = arith.constant 0 : index
      %17 = memref.load %arg2[%c0_9] : memref<1xi32, #tpu.memory_space<smem>>
      %18 = arith.sitofp %17 : i32 to f32
      %19 = vector.broadcast %18 : f32 to vector<1x1xf32>
      %c0_10 = arith.constant 0 : index
      %20 = memref.load %arg14[%c0_10] : memref<2xf32, #tpu.memory_space<smem>>
      %21 = vector.broadcast %20 : f32 to vector<1x1xf32>
      %c1 = arith.constant 1 : index
      %22 = memref.load %arg14[%c1] : memref<2xf32, #tpu.memory_space<smem>>
      %23 = vector.broadcast %22 : f32 to vector<1x1xf32>
      %cst_11 = arith.constant 4.000000e+02 : f32
      %24 = vector.broadcast %cst_11 : f32 to vector<1x1xf32>
      %25 = arith.mulf %19, %24 : vector<1x1xf32>
      %26 = arith.divf %21, %25 : vector<1x1xf32>
      %27 = arith.divf %23, %25 : vector<1x1xf32>
      %28 = arith.mulf %26, %26 : vector<1x1xf32>
      %29 = arith.subf %27, %28 : vector<1x1xf32>
      %cst_12 = arith.constant 0.000000e+00 : f32
      %30 = vector.broadcast %cst_12 : f32 to vector<1x1xf32>
      %31 = arith.maximumf %29, %30 : vector<1x1xf32>
      %cst_13 = arith.constant 9.99999974E-6 : f32
      %32 = vector.broadcast %cst_13 : f32 to vector<1x1xf32>
      %33 = arith.addf %31, %32 : vector<1x1xf32>
      %34 = math.rsqrt %33 : vector<1x1xf32>
      %35 = vector.shape_cast %26 : vector<1x1xf32> to vector<1x1xf32>
      %36 = vector.broadcast %35 : vector<1x1xf32> to vector<1x400xf32>
      %37 = vector.shape_cast %34 : vector<1x1xf32> to vector<1x1xf32>
      %38 = vector.broadcast %37 : vector<1x1xf32> to vector<1x400xf32>
      %39 = vector.broadcast %36 : vector<1x400xf32> to vector<16x400xf32>
      %40 = arith.subf %10, %39 : vector<16x400xf32>
      %41 = vector.broadcast %38 : vector<1x400xf32> to vector<16x400xf32>
      %42 = arith.mulf %40, %41 : vector<16x400xf32>
      %43 = arith.truncf %42 : vector<16x400xf32> to vector<16x400xbf16>
      %44 = vector.extract_strided_slice %43 {offsets = [0, 0], sizes = [16, 256], strides = [1, 1]} : vector<16x400xbf16> to vector<16x256xbf16>
      %c0_14 = arith.constant 0 : index
      %c0_15 = arith.constant 0 : index
      %45 = vector.load %arg6[%c0_14, %c0_15] : memref<256x256xbf16, #tpu.memory_space<vmem>>, vector<256x256xbf16>
      %cst_16 = arith.constant dense<0.000000e+00> : vector<16x256xf32>
      %46 = tpu.matmul %44, %45, %cst_16 {dimension_numbers = #tpu.dot_dimension_numbers<[1], [0], [0], [1], [0, 0, 1, 1], [], []>} : vector<16x256xbf16>, vector<256x256xbf16>, vector<16x256xf32> -> vector<16x256xf32>
      %c0_17 = arith.constant 0 : index
      %c0_18 = arith.constant 0 : index
      %47 = vector.load %arg8[%c0_17, %c0_18] : memref<1x256xf32, #tpu.memory_space<vmem>>, vector<1x256xf32>
      %48 = vector.broadcast %47 : vector<1x256xf32> to vector<16x256xf32>
      %49 = arith.addf %46, %48 : vector<16x256xf32>
      %50 = vector.extract_strided_slice %43 {offsets = [0, 128], sizes = [16, 272], strides = [1, 1]} : vector<16x400xbf16> to vector<16x272xbf16>
      %c0_19 = arith.constant 0 : index
      %c0_20 = arith.constant 0 : index
      %51 = vector.load %arg7[%c0_19, %c0_20] : memref<272x244xbf16, #tpu.memory_space<vmem>>, vector<272x244xbf16>
      %cst_21 = arith.constant dense<0.000000e+00> : vector<16x244xf32>
      %52 = tpu.matmul %50, %51, %cst_21 {dimension_numbers = #tpu.dot_dimension_numbers<[1], [0], [0], [1], [0, 0, 1, 1], [], []>} : vector<16x272xbf16>, vector<272x244xbf16>, vector<16x244xf32> -> vector<16x244xf32>
      %c0_22 = arith.constant 0 : index
      %c0_23 = arith.constant 0 : index
      %53 = vector.load %arg9[%c0_22, %c0_23] : memref<1x244xf32, #tpu.memory_space<vmem>>, vector<1x244xf32>
      %54 = vector.broadcast %53 : vector<1x244xf32> to vector<16x244xf32>
      %55 = arith.addf %52, %54 : vector<16x244xf32>
      %cst_24 = arith.constant 0.000000e+00 : f32
      %56 = vector.broadcast %cst_24 : f32 to vector<16x256xf32>
      %57 = arith.maximumf %49, %56 : vector<16x256xf32>
      %58 = arith.truncf %57 : vector<16x256xf32> to vector<16x256xbf16>
      %cst_25 = arith.constant 0.000000e+00 : f32
      %59 = vector.broadcast %cst_25 : f32 to vector<16x244xf32>
      %60 = arith.maximumf %55, %59 : vector<16x244xf32>
      %61 = arith.truncf %60 : vector<16x244xf32> to vector<16x244xbf16>
      %c0_26 = arith.constant 0 : index
      %c0_27 = arith.constant 0 : index
      %62 = vector.load %arg10[%c0_26, %c0_27] : memref<256x163xbf16, #tpu.memory_space<vmem>>, vector<256x163xbf16>
      %cst_28 = arith.constant dense<0.000000e+00> : vector<16x163xf32>
      %63 = tpu.matmul %58, %62, %cst_28 {dimension_numbers = #tpu.dot_dimension_numbers<[1], [0], [0], [1], [0, 0, 1, 1], [], []>} : vector<16x256xbf16>, vector<256x163xbf16>, vector<16x163xf32> -> vector<16x163xf32>
      %c0_29 = arith.constant 0 : index
      %c0_30 = arith.constant 0 : index
      %64 = vector.load %arg11[%c0_29, %c0_30] : memref<244x163xbf16, #tpu.memory_space<vmem>>, vector<244x163xbf16>
      %cst_31 = arith.constant dense<0.000000e+00> : vector<16x163xf32>
      %65 = tpu.matmul %61, %64, %cst_31 {dimension_numbers = #tpu.dot_dimension_numbers<[1], [0], [0], [1], [0, 0, 1, 1], [], []>} : vector<16x244xbf16>, vector<244x163xbf16>, vector<16x163xf32> -> vector<16x163xf32>
      %66 = arith.addf %63, %65 : vector<16x163xf32>
      %c0_32 = arith.constant 0 : index
      %c0_33 = arith.constant 0 : index
      %67 = vector.load %arg12[%c0_32, %c0_33] : memref<1x163xf32, #tpu.memory_space<vmem>>, vector<1x163xf32>
      %68 = vector.broadcast %67 : vector<1x163xf32> to vector<16x163xf32>
      %69 = arith.addf %66, %68 : vector<16x163xf32>
      %c0_34 = arith.constant 0 : index
      %c0_35 = arith.constant 0 : index
      %70 = vector.load %arg13[%c0_34, %c0_35] : memref<16x163xf32, #tpu.memory_space<vmem>>, vector<16x163xf32>
      tpu.vector_store %arg13[%c0_34, %c0_35], %69 {strides = array<i32>} : memref<16x163xf32, #tpu.memory_space<vmem>>, vector<16x163xf32>,
    } else {
    }
    return
  }
  func.func @transform_0(%arg0: i32, %arg1: i32, %arg2: memref<1xi32, #tpu.memory_space<smem>>) -> (i32, i32) {
    %c0_i32 = arith.constant 0 : i32
    %c0_i32_0 = arith.constant 0 : i32
    return %arg1, %c0_i32 : i32, i32
  }
  func.func @transform_1(%arg0: i32, %arg1: i32, %arg2: memref<1xi32, #tpu.memory_space<smem>>) -> (i32, i32) {
    %c0_i32 = arith.constant 0 : i32
    %c0_i32_0 = arith.constant 0 : i32
    %c0_i32_1 = arith.constant 0 : i32
    return %c0_i32, %c0_i32_0 : i32, i32
  }
  func.func @transform_2(%arg0: i32, %arg1: i32, %arg2: memref<1xi32, #tpu.memory_space<smem>>) -> (i32, i32) {
    %c0_i32 = arith.constant 0 : i32
    %c0_i32_0 = arith.constant 0 : i32
    %c0_i32_1 = arith.constant 0 : i32
    return %c0_i32, %c0_i32_0 : i32, i32
  }
  func.func @transform_3(%arg0: i32, %arg1: i32, %arg2: memref<1xi32, #tpu.memory_space<smem>>) -> (i32, i32) {
    %c0_i32 = arith.constant 0 : i32
    %c0_i32_0 = arith.constant 0 : i32
    %c0_i32_1 = arith.constant 0 : i32
    return %c0_i32, %c0_i32_0 : i32, i32
  }
  func.func @transform_4(%arg0: i32, %arg1: i32, %arg2: memref<1xi32, #tpu.memory_space<smem>>) -> (i32, i32) {
    %c0_i32 = arith.constant 0 : i32
    %c0_i32_0 = arith.constant 0 : i32
    %c0_i32_1 = arith.constant 0 : i32
    return %c0_i32, %c0_i32_0 : i32, i32
  }
  func.func @transform_5(%arg0: i32, %arg1: i32, %arg2: memref<1xi32, #tpu.memory_space<smem>>) -> (i32, i32) {
    %c0_i32 = arith.constant 0 : i32
    %c0_i32_0 = arith.constant 0 : i32
    %c0_i32_1 = arith.constant 0 : i32
    return %c0_i32, %c0_i32_0 : i32, i32
  }
  func.func @transform_6(%arg0: i32, %arg1: i32, %arg2: memref<1xi32, #tpu.memory_space<smem>>) -> (i32, i32) {
    %c0_i32 = arith.constant 0 : i32
    %c0_i32_0 = arith.constant 0 : i32
    %c0_i32_1 = arith.constant 0 : i32
    return %c0_i32, %c0_i32_0 : i32, i32
  }
  func.func @transform_7(%arg0: i32, %arg1: i32, %arg2: memref<1xi32, #tpu.memory_space<smem>>) -> (i32, i32) {
    %c0_i32 = arith.constant 0 : i32
    %c0_i32_0 = arith.constant 0 : i32
    %c0_i32_1 = arith.constant 0 : i32
    return %c0_i32, %c0_i32_0 : i32, i32
  }
  func.func @transform_8(%arg0: i32, %arg1: i32, %arg2: memref<1xi32, #tpu.memory_space<smem>>) -> (i32, i32) {
    %c0_i32 = arith.constant 0 : i32
    %c0_i32_0 = arith.constant 0 : i32
    %c0_i32_1 = arith.constant 0 : i32
    return %c0_i32, %c0_i32_0 : i32, i32
  }
  func.func @transform_9(%arg0: i32, %arg1: i32, %arg2: memref<1xi32, #tpu.memory_space<smem>>) -> (i32, i32) {
    %c0_i32 = arith.constant 0 : i32
    %c0_i32_0 = arith.constant 0 : i32
    %c0_i32_1 = arith.constant 0 : i32
    return %c0_i32, %c0_i32_0 : i32, i32
  }
  func.func @transform_10(%arg0: i32, %arg1: i32, %arg2: memref<1xi32, #tpu.memory_space<smem>>) -> (i32, i32) {
    %0 = arith.muli %arg1, %arg0 : i32
    %c0_i32 = arith.constant 0 : i32
    %c0_i32_0 = arith.constant 0 : i32
    return %0, %c0_i32 : i32, i32
  }
}

</mosaic_0001>

<bundles_post_ra>
// kernel: tpu_custom_call.1
= control target key start
LH: loop header
LB: loop body
LE: loop exit
PB: predicated region body
PF: predicated region fallthrough
CT: control target
= control target key end

     0   :  { %s4288_s0 = inlined_call_operand.<no memory space> [shape: s32[1], index: 0, kind: input, shape index: {}]   ;;  %s4289_s1 = inlined_call_operand.vmem [shape: f32[16,166], index: 1, kind: input, shape index: {}]   ;;  %s4290_s2 = inlined_call_operand.vmem [shape: bf16[166,400], index: 2, kind: input, shape index: {}]   ;;  %s4291_s3 = inlined_call_operand.vmem [shape: f32[1,400], index: 3, kind: input, shape index: {}]   ;;  %s4292_s4 = inlined_call_operand.hbm [shape: bf16[256,256], index: 4, kind: input, shape index: {}]   ;;  %s4293_s5 = inlined_call_operand.vmem [shape: bf16[272,244], index: 5, kind: input, shape index: {}]   ;;  %s4294_s6 = inlined_call_operand.vmem [shape: f32[1,256], index: 6, kind: input, shape index: {}]   ;;  %s4295_s7 = inlined_call_operand.vmem [shape: f32[1,244], index: 7, kind: input, shape index: {}]   ;;  %s4296_s8 = inlined_call_operand.vmem [shape: bf16[256,163], index: 8, kind: input, shape index: {}]   ;;  %s4297_s9 = inlined_call_operand.vmem [shape: bf16[244,163], index: 9, kind: input, shape index: {}]   ;;  %s4298_s10 = inlined_call_operand.vmem [shape: f32[1,163], index: 10, kind: input, shape index: {}]   ;;  %s4299_s11 = inlined_call_operand.hbm [shape: f32[16,163], index: 11, kind: output, shape index: {}]  }
   0x1   :  { %16 = sst [smem:[#allocation4]] %s4288_s0 }
   0x2   :  { %17 = vsyncpa [#allocation6], 0 }
   0x3   :  { %18 = vsyncpa [#allocation7], 0 }
   0x4   :  { %20 = vsyncpa [#allocation7 + $0x1], 0  ;;  %s3242_s19 = smov 0   ;;  %s3244_s20 = smov 0  }
   0x5   :  { %s3246_s21 = smov 0  }
   0x6 LB: > { %s2160_s0 = sadd.s32 4294967295, %s3171_s21   ;;  %s2161_s22 = sadd.s32 4294967294, %s3171_s21   ;;  %s3171_s21 = sphi %s3246_s21, %s26_s21   ;;  %s3167_s20 = sphi %s3244_s20, %s4304_s20   ;;  %s3163_s19 = sphi %s3242_s19, %s4303_s19  }
   0x7   : > { %s38_s23 = sadd.s32 1, %s3167_s20  ;;  %p2162_p0 = scmp.ge.s32.totalorder %s3171_s21, 1 }
   0x8   : > { %p40_p1 = scmp.ge.s32.totalorder %s38_s23, 2  ;;  %p286_p2 = scmp.lt.s32.totalorder %s3171_s21, 3 }
   0x9   : > { %p3264_p3 = scmp.eq.s32.totalorder %s2160_s0, 0  ;;  %s313_s27 = sshll.u32 %s4292_s4, 4  ;;  %s314_s27 = int_to_ptr.hbm [resolvable:$true] %s313_s27 }
   0xa   : > { %s4306_s23 = smov (%p40_p1, %s38_s23), 0  ;;  %p287_p4 = pnand %p2162_p0, %p286_p2 }
   0xb   : > { %s3173_s28 = smov [#allocation5]   ;;  %s3174_s30 = smov 128  }
   0xc   : > { %p3035_p5 = pneg %p287_p4  ;;  %s315_s29 = sshll.u32 %s3173_s28, 4  ;;  %s316_s29 = int_to_ptr.vmem [resolvable:$true] %s315_s29 }
   0xd   : > { %s3175_s12 = smov 8   ;;  %349 = sbr.rel (%p287_p4) target bundleno = 859 (0x35b), region = 60 }
   0xe   : > { %p3036_p6 = pnand %p3264_p3, %p3035_p5 }
  0x10   : > { %3038 = dma.hbm_to_vmem [thread:$0]  (!%p3036_p6), %s314_s27, 4096, %s316_s29, [#allocation6], %s3174_s30, %s3174_s30, %s3175_s12  }
  0x12   : > { %3154 = dma.done.wait (%p3264_p3), [#allocation6], 4096  }
  0x13   : > { %3156 = vsyncadd (%p3264_p3), [#allocation6], 4294963200  ;;  %vm675_vm0 = vcmask 1042432   ;;  %v2281_v0 = vld [vmem:[%s4290_s2 + $0xe0] sm:$0xf]  ;;  %v400_v59 = vld [vmem:[%s4289_s1 + $0x8] sm:$0xff] }
  0x14   : > { %v2885_v1 = vld [vmem:[%s4290_s2 + $0xec] sm:$0xf0]  ;;  %v2883_v2 = vld [vmem:[%s4290_s2 + $0xe4] sm:$0xf]  ;;  %v2283_v4 = vld [vmem:[%s4290_s2 + $0xf0] sm:$0xf0] }
  0x15   : > { %v2282_v3 = vor.u32 %v2885_v1, %v2281_v0  ;;  %v3294_v5 = vld [vmem:[%s4290_s2 + $0x140] sm:$0x77]  ;;  %v3299_v6 = vld [vmem:[%s4290_s2 + $0x148] sm:$0x77]  ;;  %v2286_v7 = vor.u32 %v2883_v2, %v2283_v4  ;;  %v2881_v11 = vld [vmem:[%s4290_s2 + $0xcc] sm:$0xf0] }
  0x16   : > { %v583_v8 = vunpack.c.l.b16 %v3294_v5  ;;  %v585_v9 = vunpack.c.l.b16 %v3299_v6  ;;  %v2265_v10 = vld [vmem:[%s4290_s2 + $0xc0] sm:$0xf]  ;;  %v2879_v12 = vld [vmem:[%s4290_s2 + $0xc4] sm:$0xf]  ;;  %v2267_v13 = vld [vmem:[%s4290_s2 + $0xd0] sm:$0xf0] }
  0x17   : > { %688 = vmatpush.bf16.msra.mxu0 %v2282_v3  ;;  %v2313_v14 = vld [vmem:[%s4290_s2 + $0x120] sm:$0xf]  ;;  %v2893_v15 = vld [vmem:[%s4290_s2 + $0x12c] sm:$0xf0]  ;;  %716 = vmatpush.bf16.msra.mxu2 %v2286_v7  ;;  %v2266_v18 = vor.u32 %v2881_v11, %v2265_v10  ;;  %v2270_v19 = vor.u32 %v2879_v12, %v2267_v13  ;;  %v2321_v20 = vld [vmem:[%s4290_s2 + $0x128] sm:$0xf] }
  0x18   : > { %v627_v16 = vpack.c.b16 %v583_v8, %v583_v8  ;;  %v629_v17 = vpack.c.b16 %v585_v9, %v585_v9  ;;  %v2894_v21 = vld [vmem:[%s4290_s2 + $0x134] sm:$0xf0]  ;;  %v2249_v22 = vld [vmem:[%s4290_s2 + $0xa0] sm:$0xf]  ;;  %v2877_v23 = vld [vmem:[%s4290_s2 + $0xac] sm:$0xf0]  ;;  %v2314_v28 = vor.u32 %v2893_v15, %v2313_v14 }
  0x19   : > { %v2875_v24 = vld [vmem:[%s4290_s2 + $0xa4] sm:$0xf]  ;;  %v2251_v25 = vld [vmem:[%s4290_s2 + $0xb0] sm:$0xf0]  ;;  %v2322_v29 = vor.u32 %v2894_v21, %v2321_v20  ;;  %v2297_v30 = vld [vmem:[%s4290_s2 + $0x100] sm:$0xf]  ;;  %v2250_v33 = vor.u32 %v2877_v23, %v2249_v22 }
  0x1a   : > { %v677_v26 = vsel %vm675_vm0, %v627_v16, 0  ;;  %v683_v27 = vsel %vm675_vm0, %v629_v17, 0  ;;  %v2889_v31 = vld [vmem:[%s4290_s2 + $0x10c] sm:$0xf0]  ;;  %v2305_v32 = vld [vmem:[%s4290_s2 + $0x108] sm:$0xf]  ;;  %v2254_v34 = vor.u32 %v2875_v24, %v2251_v25  ;;  %v584_v25 = vunpack.c.h.b16 %v3294_v5 }
  0x1b   : > { %707 = vmatpush.bf16.msra.mxu1 %v677_v26  ;;  %763 = vmatpush.bf16.msra.mxu3 %v683_v27  ;;  %v2890_v35 = vld [vmem:[%s4290_s2 + $0x114] sm:$0xf0]  ;;  %v2233_v36 = vld [vmem:[%s4290_s2 + $0x80] sm:$0xf]  ;;  %v2873_v37 = vld [vmem:[%s4290_s2 + $0x8c] sm:$0xf0]  ;;  %v2298_v44 = vor.u32 %v2889_v31, %v2297_v30  ;;  %v586_v26 = vunpack.c.h.b16 %v3299_v6 }
  0x1c   : > { %689 = vmatpush.bf16.msra.mxu0 %v2266_v18  ;;  %717 = vmatpush.bf16.msra.mxu2 %v2270_v19  ;;  %v2871_v38 = vld [vmem:[%s4290_s2 + $0x84] sm:$0xf]  ;;  %v2235_v39 = vld [vmem:[%s4290_s2 + $0x90] sm:$0xf0]  ;;  %v2289_v40 = vld [vmem:[%s4290_s2 + $0xe8] sm:$0xf]  ;;  %v2306_v45 = vor.u32 %v2890_v35, %v2305_v32  ;;  %v2234_v46 = vor.u32 %v2873_v37, %v2233_v36 }
  0x1d   : > { %v2886_v41 = vld [vmem:[%s4290_s2 + $0xf4] sm:$0xf0]  ;;  %v2884_v42 = vld [vmem:[%s4290_s2 + $0xec] sm:$0xf]  ;;  %v2291_v43 = vld [vmem:[%s4290_s2 + $0xf8] sm:$0xf0]  ;;  %v2238_v47 = vor.u32 %v2871_v38, %v2235_v39  ;;  %v628_v39 = vpack.c.b16 %v584_v25, %v584_v25 }
  0x1e   : > { %v2217_v48 = vld [vmem:[%s4290_s2 + $0x60] sm:$0xf]  ;;  %v2869_v49 = vld [vmem:[%s4290_s2 + $0x6c] sm:$0xf0]  ;;  %v2290_v50 = vor.u32 %v2886_v41, %v2289_v40  ;;  %v2294_v51 = vor.u32 %v2884_v42, %v2291_v43  ;;  %v2867_v52 = vld [vmem:[%s4290_s2 + $0x64] sm:$0xf]  ;;  %v630_v40 = vpack.c.b16 %v586_v26, %v586_v26 }
  0x1f   : > { %708 = vmatpush.bf16.msra.mxu1 %v2314_v28  ;;  %764 = vmatpush.bf16.msra.mxu3 %v2322_v29  ;;  %v2219_v53 = vld [vmem:[%s4290_s2 + $0x70] sm:$0xf0]  ;;  %v2273_v54 = vld [vmem:[%s4290_s2 + $0xc8] sm:$0xf]  ;;  %v2882_v55 = vld [vmem:[%s4290_s2 + $0xd4] sm:$0xf0]  ;;  %v2218_v60 = vor.u32 %v2869_v49, %v2217_v48 }
  0x20   : > { %690 = vmatpush.bf16.msra.mxu0 %v2250_v33  ;;  %718 = vmatpush.bf16.msra.mxu2 %v2254_v34  ;;  %v2880_v56 = vld [vmem:[%s4290_s2 + $0xcc] sm:$0xf]  ;;  %v2275_v57 = vld [vmem:[%s4290_s2 + $0xd8] sm:$0xf0]  ;;  %v2201_v58 = vld [vmem:[%s4290_s2 + $0x40] sm:$0xf]  ;;  %v2222_v61 = vor.u32 %v2867_v52, %v2219_v53  ;;  %v2274_v2 = vor.u32 %v2882_v55, %v2273_v54 }
  0x21   : > { %v2865_v62 = vld [vmem:[%s4290_s2 + $0x4c] sm:$0xf0]  ;;  %v2863_v63 = vld [vmem:[%s4290_s2 + $0x44] sm:$0xf]  ;;  %v402_v0 = vld [vmem:[%s4289_s1 + $0x18] sm:$0xff]  ;;  %v404_v1 = vmax.f32 %v400_v59, 0.0  ;;  %v2278_v3 = vor.u32 %v2880_v56, %v2275_v57 }
  0x22   : > { %v2203_v4 = vld [vmem:[%s4290_s2 + $0x50] sm:$0xf0]  ;;  %v2257_v7 = vld [vmem:[%s4290_s2 + $0xa8] sm:$0xf]  ;;  %v406_v8 = vmax.f32 %v402_v0, 0.0  ;;  %vm671_vm1 = vcmask 310272   ;;  %v2202_v13 = vor.u32 %v2865_v62, %v2201_v58 }
  0x23   : > { %709 = vmatpush.bf16.msra.mxu1 %v2298_v44  ;;  %765 = vmatpush.bf16.msra.mxu3 %v2306_v45  ;;  %v2878_v9 = vld [vmem:[%s4290_s2 + $0xb4] sm:$0xf0]  ;;  %v2876_v10 = vld [vmem:[%s4290_s2 + $0xac] sm:$0xf]  ;;  %v2259_v11 = vld [vmem:[%s4290_s2 + $0xb8] sm:$0xf0]  ;;  %v2206_v14 = vor.u32 %v2863_v63, %v2203_v4 }
  0x24   : > { %691 = vmatpush.bf16.msra.mxu0 %v2234_v46  ;;  %719 = vmatpush.bf16.msra.mxu2 %v2238_v47  ;;  %v3431_v12 = vpack.c.bf16 %v406_v8, %v404_v1  ;;  %v2185_v15 = vld [vmem:[%s4290_s2 + $0x20] sm:$0xf]  ;;  %v2861_v16 = vld [vmem:[%s4290_s2 + $0x2c] sm:$0xf0]  ;;  %v2258_v17 = vor.u32 %v2878_v9, %v2257_v7  ;;  %v2262_v18 = vor.u32 %v2876_v10, %v2259_v11  ;;  %v2859_v19 = vld [vmem:[%s4290_s2 + $0x24] sm:$0xf] }
  0x25   : > { %v2187_v20 = vld [vmem:[%s4290_s2 + $0x30] sm:$0xf0]  ;;  %v2241_v21 = vld [vmem:[%s4290_s2 + $0x88] sm:$0xf]  ;;  %v2874_v22 = vld [vmem:[%s4290_s2 + $0x94] sm:$0xf0]  ;;  %v2186_v28 = vor.u32 %v2861_v16, %v2185_v15 }
  0x26   : > { %2329 = vmatmul.msk.bf16.vlgmr.msra.gmra.mxu3 %vm671_vm1, %v3431_v12  ;;  %v2872_v23 = vld [vmem:[%s4290_s2 + $0x8c] sm:$0xf]  ;;  %v2243_v24 = vld [vmem:[%s4290_s2 + $0x98] sm:$0xf0]  ;;  %2327 = vmatmul.msk.bf16.vlgmr.msra.gmra.mxu1 %vm671_vm1, %v3431_v12  ;;  %v399_v27 = vld [vmem:[%s4289_s1] sm:$0xff]  ;;  %v2190_v29 = vor.u32 %v2859_v19, %v2187_v20  ;;  %v2242_v6 = vor.u32 %v2874_v22, %v2241_v21  ;;  %v686_v52 = vsel %vm675_vm0, %v630_v40, 0 }
  0x27   : > { %744 = vmatpush.bf16.msrb.mxu1 %v2290_v50  ;;  %772 = vmatpush.bf16.msrb.mxu3 %v2294_v51  ;;  %v2169_v30 = vld [vmem:[%s4290_s2] sm:$0xf]  ;;  %v2857_v31 = vld [vmem:[%s4290_s2 + $0xc] sm:$0xf0]  ;;  %v2246_v32 = vor.u32 %v2872_v23, %v2243_v24  ;;  %v2855_v33 = vld [vmem:[%s4290_s2 + $0x4] sm:$0xf] }
  0x28   : > { %692 = vmatpush.bf16.msra.mxu0 %v2218_v60  ;;  %720 = vmatpush.bf16.msra.mxu2 %v2222_v61  ;;  %v401_v5 = vld [vmem:[%s4289_s1 + $0x10] sm:$0xff]  ;;  %v2225_v35 = vld [vmem:[%s4290_s2 + $0x68] sm:$0xf]  ;;  %v2870_v36 = vld [vmem:[%s4290_s2 + $0x74] sm:$0xf0]  ;;  %v403_v41 = vmax.f32 %v399_v27, 0.0  ;;  %v2170_v43 = vor.u32 %v2857_v31, %v2169_v30 }
  0x29   : > { %v2171_v34 = vld [vmem:[%s4290_s2 + $0x10] sm:$0xf0]  ;;  %v2868_v37 = vld [vmem:[%s4290_s2 + $0x6c] sm:$0xf]  ;;  %v2227_v38 = vld [vmem:[%s4290_s2 + $0x78] sm:$0xf0]  ;;  %v2226_v45 = vor.u32 %v2870_v36, %v2225_v35 }
  0x2a   : > { %v405_v42 = vmax.f32 %v401_v5, 0.0  ;;  %v2174_v44 = vor.u32 %v2855_v33, %v2171_v34  ;;  %v2230_v46 = vor.u32 %v2868_v37, %v2227_v38  ;;  %v2209_v47 = vld [vmem:[%s4290_s2 + $0x48] sm:$0xf]  ;;  %v2866_v48 = vld [vmem:[%s4290_s2 + $0x54] sm:$0xf0]  ;;  %v680_v50 = vsel %vm675_vm0, %v628_v39, 0 }
  0x2b   : > { %745 = vmatpush.bf16.msrb.mxu1 %v2274_v2  ;;  %773 = vmatpush.bf16.msrb.mxu3 %v2278_v3  ;;  %v2864_v49 = vld [vmem:[%s4290_s2 + $0x4c] sm:$0xf]  ;;  %v2211_v51 = vld [vmem:[%s4290_s2 + $0x58] sm:$0xf0]  ;;  %v2891_v53 = vld [vmem:[%s4290_s2 + $0x124] sm:$0xf]  ;;  %v2210_v58 = vor.u32 %v2866_v48, %v2209_v47 }
  0x2c   : > { %693 = vmatpush.bf16.msra.mxu0 %v2202_v13  ;;  %721 = vmatpush.bf16.msra.mxu2 %v2206_v14  ;;  %v407_v54 = vpack.c.bf16 %v405_v42, %v403_v41  ;;  %v2315_v55 = vld [vmem:[%s4290_s2 + $0x130] sm:$0xf0]  ;;  %v2892_v56 = vld [vmem:[%s4290_s2 + $0x12c] sm:$0xf]  ;;  %v2323_v57 = vld [vmem:[%s4290_s2 + $0x138] sm:$0xf0]  ;;  %v2214_v59 = vor.u32 %v2864_v49, %v2211_v51 }
  0x2d   : > { %v2193_v60 = vld [vmem:[%s4290_s2 + $0x28] sm:$0xf]  ;;  %v2862_v61 = vld [vmem:[%s4290_s2 + $0x34] sm:$0xf0]  ;;  %v2860_v62 = vld [vmem:[%s4290_s2 + $0x2c] sm:$0xf]  ;;  %v2318_v0 = vor.u32 %v2891_v53, %v2315_v55  ;;  %v2326_v1 = vor.u32 %v2892_v56, %v2323_v57 }
  0x2e   : > { %v2195_v63 = vld [vmem:[%s4290_s2 + $0x38] sm:$0xf0]  ;;  %v2887_v2 = vld [vmem:[%s4290_s2 + $0x104] sm:$0xf]  ;;  %v2299_v3 = vld [vmem:[%s4290_s2 + $0x110] sm:$0xf0]  ;;  %v2194_v8 = vor.u32 %v2862_v61, %v2193_v60 }
  0x2f   : > { %746 = vmatpush.bf16.msrb.mxu1 %v2258_v17  ;;  %774 = vmatpush.bf16.msrb.mxu3 %v2262_v18  ;;  %v2888_v4 = vld [vmem:[%s4290_s2 + $0x10c] sm:$0xf]  ;;  %v2307_v7 = vld [vmem:[%s4290_s2 + $0x118] sm:$0xf0]  ;;  %v2198_v9 = vor.u32 %v2860_v62, %v2195_v63  ;;  %v2177_v10 = vld [vmem:[%s4290_s2 + $0x8] sm:$0xf]  ;;  %v2302_v15 = vor.u32 %v2887_v2, %v2299_v3 }
  0x30   : > { %694 = vmatpush.bf16.msra.mxu0 %v2186_v28  ;;  %722 = vmatpush.bf16.msra.mxu2 %v2190_v29  ;;  %v2858_v11 = vld [vmem:[%s4290_s2 + $0x14] sm:$0xf0]  ;;  %v2856_v13 = vld [vmem:[%s4290_s2 + $0xc] sm:$0xf]  ;;  %v2179_v14 = vld [vmem:[%s4290_s2 + $0x18] sm:$0xf0]  ;;  %v2310_v16 = vor.u32 %v2888_v4, %v2307_v7 }
  0x31   : > { %v2178_v17 = vor.u32 %v2858_v11, %v2177_v10  ;;  %v2182_v18 = vor.u32 %v2856_v13, %v2179_v14  ;;  %v451_v20 = vld [vmem:[%s4291_s3] sm:$0xf]  ;;  %p2331_p7 = scmp.ne.s32.totalorder %s3163_s19, 0 }
  0x32   : > { %v453_v21 = vperm.slane %v451_v20, 0  ;;  %v455_v31 = vperm.slane %v451_v20, 2  ;;  %v456_v36 = vperm.slane %v451_v20, 3  ;;  %v454_v37 = vperm.slane %v451_v20, 1  ;;  %s827_s25 = sld [smem:[#allocation4]] (!%p2331_p7) }
  0x33   : > { %747 = vmatpush.bf16.msrb.mxu1 %v2242_v6  ;;  %775 = vmatpush.bf16.msrb.mxu3 %v2246_v32 }
  0x34   : > { %695 = vmatpush.bf16.msra.mxu0 %v2170_v43  ;;  %723 = vmatpush.bf16.msra.mxu2 %v2174_v44 }
  0x37   : > { %748 = vmatpush.bf16.msrb.mxu1 %v2226_v45  ;;  %776 = vmatpush.bf16.msrb.mxu3 %v2230_v46 }
  0x38   : > { %735 = vmatpush.bf16.msrb.mxu2 %v680_v50  ;;  %791 = vmatpush.bf16.msrb.mxu0 %v686_v52 }
  0x39   : > { %696 = vmatmul.bf16.vlgmr.msra.gmra.mxu0 %v407_v54  ;;  %724 = vmatmul.bf16.vlgmr.msra.gmra.mxu2 %v407_v54 }
  0x3b   : > { %749 = vmatpush.bf16.msrb.mxu1 %v2210_v58  ;;  %777 = vmatpush.bf16.msrb.mxu3 %v2214_v59 }
  0x3c   : > { %736 = vmatpush.bf16.msrb.mxu2 %v2318_v0  ;;  %792 = vmatpush.bf16.msrb.mxu0 %v2326_v1 }
  0x3f   : > { %750 = vmatpush.bf16.msrb.mxu1 %v2194_v8  ;;  %778 = vmatpush.bf16.msrb.mxu3 %v2198_v9 }
  0x40   : > { %737 = vmatpush.bf16.msrb.mxu2 %v2302_v15  ;;  %793 = vmatpush.bf16.msrb.mxu0 %v2310_v16 }
  0x43   : > { %751 = vmatpush.bf16.msrb.mxu1 %v2178_v17  ;;  %779 = vmatpush.bf16.msrb.mxu3 %v2182_v18 }
  0x46   : > { %752 = vmatmul.bf16.vlgmr.msrb.gmra.mxu1 %v407_v54  ;;  %780 = vmatmul.bf16.vlgmr.msrb.gmra.mxu3 %v407_v54 }
  0x49   : > { %2328 = vmatmul.msk.bf16.vlgmr.msrb.gmra.mxu2 %vm671_vm1, %v3431_v12  ;;  %2330 = vmatmul.msk.bf16.vlgmr.msrb.gmra.mxu0 %vm671_vm1, %v3431_v12 }
  0xa3   : > { %v711_v19 = vpop.f32.mrf.mxu1 }
  0xa9   : > { %v767_v23 = vpop.f32.mrf.mxu3 }
  0xab   : > { %v713_v26 = vpop.f32.mrf.mxu1 }
  0xb1   : > { %v769_v5 = vpop.f32.mrf.mxu3 }
  0xb6   : > { %v697_v22 = vpop.f32.mrf.mxu0 }
  0xb7   : > { %v698_v24 = vadd.f32 %v697_v22, %v453_v21 }
  0xb9   : > { %v3562_v25 = vadd.f32 %v711_v19, %v698_v24 }
  0xbb   : > { %v800_v27 = vmax.f32 %v3562_v25, 0.0 }
  0xbc   : > { %v725_v28 = vpop.f32.mrf.mxu2 }
  0xbd   : > { %v726_v42 = vadd.f32 %v725_v28, %v454_v37 }
  0xbe   : > { %v699_v29 = vpop.f32.mrf.mxu0 }
  0xbf   : > { %v700_v30 = vadd.f32 %v699_v29, %v453_v21 }
  0xc1   : > { %v3565_v12 = vadd.f32 %v713_v26, %v700_v30 }
  0xc3   : > { %v804_v6 = vmax.f32 %v3565_v12, 0.0  ;;  %v753_v32 = vpop.f32.mrf.mxu1 }
  0xc4   : > { %v754_v33 = vadd.f32 %v753_v32, %v455_v31  ;;  %v727_v34 = vpop.f32.mrf.mxu2 }
  0xc5   : > { %v728_v54 = vadd.f32 %v727_v34, %v454_v37 }
  0xc6   : > { %v3568_v35 = vadd.f32 %v767_v23, %v754_v33  ;;  %v795_v39 = vpop.f32.mrf.mxu0 }
  0xc8   : > { %v802_v38 = vmax.f32 %v3568_v35, 0.0 }
  0xc9   : > { %v781_v40 = vpop.f32.mrf.mxu3 }
  0xca   : > { %v782_v41 = vadd.f32 %v781_v40, %v456_v36 }
  0xcb   : > { %v755_v43 = vpop.f32.mrf.mxu1 }
  0xcc   : > { %v3571_v44 = vadd.f32 %v795_v39, %v782_v41  ;;  %v756_v45 = vadd.f32 %v755_v43, %v455_v31  ;;  %v739_v46 = vpop.f32.mrf.mxu2 }
  0xcd   : > { %v3573_v47 = vadd.f32 %v739_v46, %v726_v42 }
  0xce   : > { %v803_v48 = vmax.f32 %v3571_v44, 0.0  ;;  %v3576_v49 = vadd.f32 %v769_v5, %v756_v45  ;;  %v797_v55 = vpop.f32.mrf.mxu0 }
  0xcf   : > { %v801_v50 = vmax.f32 %v3573_v47, 0.0 }
  0xd0   : > { %v806_v51 = vmax.f32 %v3576_v49, 0.0 }
  0xd1   : > { %v783_v52 = vpop.f32.mrf.mxu3 }
  0xd2   : > { %v784_v53 = vadd.f32 %v783_v52, %v456_v36 }
  0xd3   : > { %811 = sbr.rel (%p2331_p7) target bundleno = 423 (0x1a7), region = 68 }
  0xd4   : > { %v3580_v56 = vadd.f32 %v797_v55, %v784_v53  ;;  %v741_v57 = vpop.f32.mrf.mxu2 }
  0xd5   : > { %v3582_v58 = vadd.f32 %v741_v57, %v728_v54 }
  0xd6   : > { %v807_v59 = vmax.f32 %v3580_v56, 0.0 }
  0xd7   : > { %v805_v60 = vmax.f32 %v3582_v58, 0.0 }
  0xd8   : > { %v820_v61 = vlaneseq  ;;  %v828_v0 = vstv %s827_s25  ;;  %vm846_vm3 = vcmask 130048  }
  0xda   : > { %v821_v62 = vshrl.u32 %v820_v61, 7 }
  0xdc   : > { %v822_v63 = vadd.s32 8, %v821_v62  ;;  %vm829_vm2 = vcmp.lt.s32.totalorder %v821_v62, %v828_v0 }
  0xdd   : > { %v835_v1 = vsel %vm829_vm2, %v800_v27, 0.0  ;;  %v836_v2 = vsel %vm829_vm2, %v801_v50, 0.0  ;;  %v838_v3 = vsel %vm829_vm2, %v803_v48, 0.0  ;;  %v837_v4 = vsel %vm829_vm2, %v802_v38, 0.0 }
  0xde   : > { %vm3595_vm4 = vcmp.lt.s32.totalorder %v822_v63, %v828_v0  ;;  %v844_v8 = vadd.f32 %v836_v2, %v835_v1  ;;  %v867_v9 = vmul.f32 %v835_v1, %v835_v1  ;;  %v847_v10 = vsel %vm846_vm3, %v838_v3, 0.0 }
  0xdf   : > { %v868_v11 = vmul.f32 %v836_v2, %v836_v2  ;;  %v869_v13 = vmul.f32 %v837_v4, %v837_v4  ;;  %v870_v14 = vmul.f32 %v838_v3, %v838_v3  ;;  %v839_v16 = vsel %vm3595_vm4, %v804_v6, 0.0 }
  0xe0   : > { %v845_v15 = vadd.f32 %v844_v8, %v837_v4  ;;  %v840_v20 = vsel %vm3595_vm4, %v805_v60, 0.0  ;;  %v871_v21 = vmul.f32 %v839_v16, %v839_v16  ;;  %v842_v23 = vsel %vm3595_vm4, %v807_v59, 0.0 }
  0xe1   : > { %v875_v17 = vadd.f32 %v868_v11, %v867_v9  ;;  %v877_v19 = vsel %vm846_vm3, %v870_v14, 0.0  ;;  %v841_v26 = vsel %vm3595_vm4, %v806_v51, 0.0  ;;  %v872_v28 = vmul.f32 %v840_v20, %v840_v20 }
  0xe2   : > { %v848_v18 = vadd.f32 %v847_v10, %v845_v15  ;;  %v852_v31 = vsel %vm846_vm3, %v842_v23, 0.0  ;;  %v873_v33 = vmul.f32 %v841_v26, %v841_v26  ;;  %v874_v34 = vmul.f32 %v842_v23, %v842_v23 }
  0xe3   : > { %v876_v22 = vadd.f32 %v875_v17, %v869_v13 }
  0xe4   : > { %v849_v24 = vadd.f32 %v848_v18, %v839_v16  ;;  %v882_v40 = vsel %vm846_vm3, %v874_v34, 0.0 }
  0xe5   : > { %v878_v29 = vadd.f32 %v877_v19, %v876_v22 }
  0xe6   : > { %v850_v30 = vadd.f32 %v849_v24, %v840_v20 }
  0xe7   : > { %v879_v5 = vadd.f32 %v878_v29, %v871_v21 }
  0xe8   : > { %v851_v32 = vadd.f32 %v850_v30, %v841_v26 }
  0xe9   : > { %v880_v36 = vadd.f32 %v879_v5, %v872_v28 }
  0xea   : > { %v853_v37 = vadd.f32 %v852_v31, %v851_v32 }
  0xeb   : > { %v881_v39 = vadd.f32 %v880_v36, %v873_v33 }
  0xec   : > { %854 = vadd.xlane.f32.xlu0 %v853_v37 }
  0xed   : > { %v883_v41 = vadd.f32 %v882_v40, %v881_v39 }
  0xf4   : > { %884 = vadd.xlane.f32.xlu0 %v883_v41 }
 0x15f   : > { %v855_v42 = vpop.xlane.xlu0 %854 }
 0x160   : > { %v856_v43 = vrot.slane %v855_v42, 4 }
 0x162   : > { %v857_v45 = vadd.f32 %v856_v43, %v855_v42 }
 0x164   : > { %v858_v46 = vrot.slane %v857_v45, 2 }
 0x166   : > { %v859_v52 = vadd.f32 %v858_v46, %v857_v45 }
 0x167   : > { %v885_v53 = vpop.xlane.xlu0 %884 }
 0x168   : > { %v886_v54 = vrot.slane %v885_v53, 4  ;;  %v860_v55 = vrot.slane %v859_v52, 1 }
 0x16a   : > { %v887_v57 = vadd.f32 %v886_v54, %v885_v53  ;;  %v861_v61 = vadd.f32 %v860_v55, %v859_v52 }
 0x16c   : > { %v888_v62 = vrot.slane %v887_v57, 2  ;;  %3023 = vpush %v861_v61 }
 0x16e   : > { %v889_v63 = vadd.f32 %v888_v62, %v887_v57 }
 0x170   : > { %v890_v0 = vrot.slane %v889_v63, 1 }
 0x172   : > { %v891_v1 = vadd.f32 %v890_v0, %v889_v63 }
 0x174   : > { %3025 = vpush %v891_v1 }
 0x19d   : > { %s3024_s26 = spop %3023 }
 0x19e   : > { %865 = sst [smem:[#allocation2]] %s3024_s26 }
 0x1a5   : > { %s3026_s24 = spop %3025 }
 0x1a6   : > { %895 = sst [smem:[#allocation2 + $0x1]] %s3026_s24 }
 0x1a7 PF: > { %p2333_p8 = scmp.ne.s32.totalorder %s3163_s19, 1 }
 0x1a8   : > { %s3638_s25 = sld [smem:[#allocation4]] (!%p2333_p8) }
 0x1a9   : > { %899 = sbr.rel (%p2333_p8) target bundleno = 855 (0x357), region = 76  ;;  %s903_s28 = sld [smem:[#allocation2]] (!%p2333_p8) }
 0x1aa   : > { %s2334_s29 = sld [smem:[#allocation2 + $0x1]] (!%p2333_p8) }
 0x1ae   : > { %v2393_v2 = vld [vmem:[#allocation5 + $0x70] sm:$0xf]  ;;  %v2910_v3 = vld [vmem:[#allocation5 + $0x74] sm:$0xf0]  ;;  %v2385_v9 = vld [vmem:[#allocation5 + $0x60] sm:$0xf]  ;;  %s901_s30 = scvt.s32.f32 %s3638_s25 }
 0x1af   : > { %v2457_v4 = vld [vmem:[#allocation5 + $0xf0] sm:$0xf]  ;;  %v2394_v7 = vor.u32 %v2910_v3, %v2393_v2  ;;  %v2926_v8 = vld [vmem:[#allocation5 + $0xf4] sm:$0xf0]  ;;  %v2908_v10 = vld [vmem:[#allocation5 + $0x64] sm:$0xf0] }
 0x1b0   : > { %v2458_v11 = vor.u32 %v2926_v8, %v2457_v4  ;;  %v2449_v13 = vld [vmem:[#allocation5 + $0xe0] sm:$0xf]  ;;  %v2924_v14 = vld [vmem:[#allocation5 + $0xe4] sm:$0xf0]  ;;  %v2925_v15 = vld [vmem:[#allocation5 + $0xf4] sm:$0xf]  ;;  %v2386_v16 = vor.u32 %v2908_v10, %v2385_v9 }
 0x1b1   : > { %1166 = vmatpush.bf16.msra.mxu0 %v2394_v7  ;;  %v2459_v17 = vld [vmem:[#allocation5 + $0xf8] sm:$0xf0]  ;;  %v2450_v18 = vor.u32 %v2924_v14, %v2449_v13  ;;  %v2377_v20 = vld [vmem:[#allocation5 + $0x50] sm:$0xf]  ;;  %v2906_v21 = vld [vmem:[#allocation5 + $0x54] sm:$0xf0] }
 0x1b2   : > { %1180 = vmatpush.bf16.msra.mxu1 %v2458_v11  ;;  %v2462_v19 = vor.u32 %v2925_v15, %v2459_v17  ;;  %v2923_v22 = vld [vmem:[#allocation5 + $0xe4] sm:$0xf]  ;;  %v2441_v23 = vld [vmem:[#allocation5 + $0xd0] sm:$0xf]  ;;  %v2922_v24 = vld [vmem:[#allocation5 + $0xd4] sm:$0xf0]  ;;  %v2378_v31 = vor.u32 %v2906_v21, %v2377_v20 }
 0x1b3   : > { %v2451_v26 = vld [vmem:[#allocation5 + $0xe8] sm:$0xf0]  ;;  %v2909_v29 = vld [vmem:[#allocation5 + $0x74] sm:$0xf]  ;;  %v2395_v30 = vld [vmem:[#allocation5 + $0x78] sm:$0xf0]  ;;  %v2442_v34 = vor.u32 %v2922_v24, %v2441_v23 }
 0x1b4   : > { %1208 = vmatpush.bf16.msra.mxu3 %v2462_v19  ;;  %v2454_v28 = vor.u32 %v2923_v22, %v2451_v26  ;;  %v2398_v5 = vor.u32 %v2909_v29, %v2395_v30  ;;  %v2921_v32 = vld [vmem:[#allocation5 + $0xd4] sm:$0xf]  ;;  %v2443_v33 = vld [vmem:[#allocation5 + $0xd8] sm:$0xf0]  ;;  %v2369_v36 = vld [vmem:[#allocation5 + $0x40] sm:$0xf] }
 0x1b5   : > { %1167 = vmatpush.bf16.msra.mxu0 %v2386_v16  ;;  %v2904_v37 = vld [vmem:[#allocation5 + $0x44] sm:$0xf0]  ;;  %v2907_v39 = vld [vmem:[#allocation5 + $0x64] sm:$0xf]  ;;  %v2433_v40 = vld [vmem:[#allocation5 + $0xc0] sm:$0xf]  ;;  %v2446_v43 = vor.u32 %v2921_v32, %v2443_v33 }
 0x1b6   : > { %1181 = vmatpush.bf16.msra.mxu1 %v2450_v18  ;;  %1194 = vmatpush.bf16.msra.mxu2 %v2398_v5  ;;  %v2920_v41 = vld [vmem:[#allocation5 + $0xc4] sm:$0xf0]  ;;  %v2387_v42 = vld [vmem:[#allocation5 + $0x68] sm:$0xf0]  ;;  %v2919_v46 = vld [vmem:[#allocation5 + $0xc4] sm:$0xf]  ;;  %v2370_v52 = vor.u32 %v2904_v37, %v2369_v36 }
 0x1b7   : > { %v2390_v45 = vor.u32 %v2907_v39, %v2387_v42  ;;  %v2435_v53 = vld [vmem:[#allocation5 + $0xc8] sm:$0xf0]  ;;  %v2905_v54 = vld [vmem:[#allocation5 + $0x54] sm:$0xf]  ;;  %v2379_v55 = vld [vmem:[#allocation5 + $0x58] sm:$0xf0]  ;;  %v2434_v57 = vor.u32 %v2920_v41, %v2433_v40 }
 0x1b8   : > { %1209 = vmatpush.bf16.msra.mxu3 %v2454_v28  ;;  %v2361_v61 = vld [vmem:[#allocation5 + $0x30] sm:$0xf]  ;;  %v2902_v62 = vld [vmem:[#allocation5 + $0x34] sm:$0xf0]  ;;  %v2382_v1 = vor.u32 %v2905_v54, %v2379_v55  ;;  %v2438_v2 = vor.u32 %v2919_v46, %v2435_v53  ;;  %v2903_v3 = vld [vmem:[#allocation5 + $0x44] sm:$0xf] }
 0x1b9   : > { %1168 = vmatpush.bf16.msra.mxu0 %v2378_v31  ;;  %v2425_v63 = vld [vmem:[#allocation5 + $0xb0] sm:$0xf]  ;;  %v2918_v0 = vld [vmem:[#allocation5 + $0xb4] sm:$0xf0]  ;;  %v2371_v4 = vld [vmem:[#allocation5 + $0x48] sm:$0xf0]  ;;  %v2362_v7 = vor.u32 %v2902_v62, %v2361_v61 }
 0x1ba   : > { %1182 = vmatpush.bf16.msra.mxu1 %v2442_v34  ;;  %1195 = vmatpush.bf16.msra.mxu2 %v2390_v45  ;;  %v2917_v8 = vld [vmem:[#allocation5 + $0xb4] sm:$0xf]  ;;  %v2427_v9 = vld [vmem:[#allocation5 + $0xb8] sm:$0xf0]  ;;  %v2426_v10 = vor.u32 %v2918_v0, %v2425_v63  ;;  %v2353_v11 = vld [vmem:[#allocation5 + $0x20] sm:$0xf]  ;;  %v2374_v16 = vor.u32 %v2903_v3, %v2371_v4 }
 0x1bb   : > { %v2900_v13 = vld [vmem:[#allocation5 + $0x24] sm:$0xf0]  ;;  %v2417_v14 = vld [vmem:[#allocation5 + $0xa0] sm:$0xf]  ;;  %v2430_v17 = vor.u32 %v2917_v8, %v2427_v9  ;;  %v2901_v18 = vld [vmem:[#allocation5 + $0x34] sm:$0xf] }
 0x1bc   : > { %1210 = vmatpush.bf16.msra.mxu3 %v2446_v43  ;;  %v2916_v15 = vld [vmem:[#allocation5 + $0xa4] sm:$0xf0]  ;;  %v2363_v19 = vld [vmem:[#allocation5 + $0x38] sm:$0xf0]  ;;  %v2354_v20 = vor.u32 %v2900_v13, %v2353_v11  ;;  %v2915_v21 = vld [vmem:[#allocation5 + $0xa4] sm:$0xf] }
 0x1bd   : > { %1169 = vmatpush.bf16.msra.mxu0 %v2370_v52  ;;  %v2419_v22 = vld [vmem:[#allocation5 + $0xa8] sm:$0xf0]  ;;  %v2418_v23 = vor.u32 %v2916_v15, %v2417_v14  ;;  %v2345_v24 = vld [vmem:[#allocation5 + $0x10] sm:$0xf]  ;;  %v2898_v26 = vld [vmem:[#allocation5 + $0x14] sm:$0xf0]  ;;  %v2366_v30 = vor.u32 %v2901_v18, %v2363_v19 }
 0x1be   : > { %1183 = vmatpush.bf16.msra.mxu1 %v2434_v57  ;;  %1196 = vmatpush.bf16.msra.mxu2 %v2382_v1  ;;  %v2409_v28 = vld [vmem:[#allocation5 + $0x90] sm:$0xf]  ;;  %v2914_v29 = vld [vmem:[#allocation5 + $0x94] sm:$0xf0]  ;;  %v2422_v31 = vor.u32 %v2915_v21, %v2419_v22  ;;  %v2899_v5 = vld [vmem:[#allocation5 + $0x24] sm:$0xf]  ;;  %v2346_v33 = vor.u32 %v2898_v26, %v2345_v24 }
 0x1bf   : > { %v2355_v32 = vld [vmem:[#allocation5 + $0x28] sm:$0xf0]  ;;  %v2337_v34 = vld [vmem:[#allocation5] sm:$0xf]  ;;  %v2913_v36 = vld [vmem:[#allocation5 + $0x94] sm:$0xf]  ;;  %v2410_v39 = vor.u32 %v2914_v29, %v2409_v28 }
 0x1c0   : > { %1211 = vmatpush.bf16.msra.mxu3 %v2438_v2  ;;  %v2411_v37 = vld [vmem:[#allocation5 + $0x98] sm:$0xf0]  ;;  %v2896_v40 = vld [vmem:[#allocation5 + $0x4] sm:$0xf0]  ;;  %v2521_v41 = vld [vmem:[%s4293_s5 + $0x70] sm:$0xf]  ;;  %v2358_v52 = vor.u32 %v2899_v5, %v2355_v32  ;;  %v902_v5 = vstv %s901_s30 }
 0x1c1   : > { %1170 = vmatpush.bf16.msra.mxu0 %v2362_v7  ;;  %v2942_v42 = vld [vmem:[%s4293_s5 + $0x74] sm:$0xf0]  ;;  %v2401_v43 = vld [vmem:[#allocation5 + $0x80] sm:$0xf]  ;;  %v2912_v45 = vld [vmem:[#allocation5 + $0x84] sm:$0xf0]  ;;  %v2414_v53 = vor.u32 %v2913_v36, %v2411_v37  ;;  %v2338_v61 = vor.u32 %v2896_v40, %v2337_v34 }
 0x1c2   : > { %1184 = vmatpush.bf16.msra.mxu1 %v2426_v10  ;;  %1197 = vmatpush.bf16.msra.mxu2 %v2374_v16  ;;  %v2585_v46 = vld [vmem:[%s4293_s5 + $0xf0] sm:$0xf]  ;;  %v2958_v54 = vld [vmem:[%s4293_s5 + $0xf4] sm:$0xf0]  ;;  %v2897_v55 = vld [vmem:[#allocation5 + $0x14] sm:$0xf]  ;;  %v2522_v0 = vor.u32 %v2942_v42, %v2521_v41  ;;  %v2402_v1 = vor.u32 %v2912_v45, %v2401_v43 }
 0x1c3   : > { %v2347_v57 = vld [vmem:[#allocation5 + $0x18] sm:$0xf0]  ;;  %v2911_v62 = vld [vmem:[#allocation5 + $0x84] sm:$0xf]  ;;  %v2403_v63 = vld [vmem:[#allocation5 + $0x88] sm:$0xf0]  ;;  %v2586_v4 = vor.u32 %v2958_v54, %v2585_v46 }
 0x1c4   : > { %1212 = vmatpush.bf16.msra.mxu3 %v2430_v17  ;;  %v2941_v2 = vld [vmem:[%s4293_s5 + $0x74] sm:$0xf]  ;;  %v2523_v3 = vld [vmem:[%s4293_s5 + $0x78] sm:$0xf0]  ;;  %v2513_v7 = vld [vmem:[%s4293_s5 + $0x60] sm:$0xf]  ;;  %v2350_v10 = vor.u32 %v2897_v55, %v2347_v57  ;;  %v2406_v11 = vor.u32 %v2911_v62, %v2403_v63  ;;  %v906_v62 = vstv %s2334_s29 }
 0x1c5   : > { %1171 = vmatpush.bf16.msra.mxu0 %v2354_v20  ;;  %v2940_v8 = vld [vmem:[%s4293_s5 + $0x64] sm:$0xf0]  ;;  %v2577_v9 = vld [vmem:[%s4293_s5 + $0xe0] sm:$0xf]  ;;  %v2895_v14 = vld [vmem:[#allocation5 + $0x4] sm:$0xf]  ;;  %v2526_v16 = vor.u32 %v2941_v2, %v2523_v3 }
 0x1c6   : > { %1185 = vmatpush.bf16.msra.mxu1 %v2418_v23  ;;  %1198 = vmatpush.bf16.msra.mxu2 %v2366_v30  ;;  %v2956_v13 = vld [vmem:[%s4293_s5 + $0xe4] sm:$0xf0]  ;;  %v2339_v15 = vld [vmem:[#allocation5 + $0x8] sm:$0xf0]  ;;  %v2514_v17 = vor.u32 %v2940_v8, %v2513_v7  ;;  %v2939_v18 = vld [vmem:[%s4293_s5 + $0x64] sm:$0xf] }
 0x1c7   : > { %v2515_v19 = vld [vmem:[%s4293_s5 + $0x68] sm:$0xf0]  ;;  %v2578_v20 = vor.u32 %v2956_v13, %v2577_v9  ;;  %v2505_v21 = vld [vmem:[%s4293_s5 + $0x50] sm:$0xf]  ;;  %v2938_v22 = vld [vmem:[%s4293_s5 + $0x54] sm:$0xf0]  ;;  %v2342_v23 = vor.u32 %v2895_v14, %v2339_v15 }
 0x1c8   : > { %1213 = vmatpush.bf16.msra.mxu3 %v2422_v31  ;;  %v2569_v24 = vld [vmem:[%s4293_s5 + $0xd0] sm:$0xf]  ;;  %v2954_v26 = vld [vmem:[%s4293_s5 + $0xd4] sm:$0xf0]  ;;  %v2518_v28 = vor.u32 %v2939_v18, %v2515_v19  ;;  %v2506_v29 = vor.u32 %v2938_v22, %v2505_v21  ;;  %v2937_v30 = vld [vmem:[%s4293_s5 + $0x54] sm:$0xf] }
 0x1c9   : > { %1172 = vmatpush.bf16.msra.mxu0 %v2346_v33  ;;  %v2507_v31 = vld [vmem:[%s4293_s5 + $0x58] sm:$0xf0]  ;;  %v2570_v32 = vor.u32 %v2954_v26, %v2569_v24  ;;  %v2497_v33 = vld [vmem:[%s4293_s5 + $0x40] sm:$0xf]  ;;  %v2936_v34 = vld [vmem:[%s4293_s5 + $0x44] sm:$0xf0] }
 0x1ca   : > { %1186 = vmatpush.bf16.msra.mxu1 %v2410_v39  ;;  %1199 = vmatpush.bf16.msra.mxu2 %v2358_v52  ;;  %v907_v36 = vmul.f32 400.0, %v902_v5  ;;  %v2561_v37 = vld [vmem:[%s4293_s5 + $0xc0] sm:$0xf]  ;;  %v2952_v39 = vld [vmem:[%s4293_s5 + $0xc4] sm:$0xf0]  ;;  %v2510_v40 = vor.u32 %v2937_v30, %v2507_v31  ;;  %v2498_v41 = vor.u32 %v2936_v34, %v2497_v33  ;;  %vm1441_vm12 = vcmask 130048  }
 0x1cb   : > { %v2562_v42 = vor.u32 %v2952_v39, %v2561_v37  ;;  %v2593_v3 = vld [vmem:[%s4293_s5 + $0x100] sm:$0xf]  ;;  %v2489_v8 = vld [vmem:[%s4293_s5 + $0x30] sm:$0xf]  ;;  %v2934_v9 = vld [vmem:[%s4293_s5 + $0x34] sm:$0xf0] }
 0x1cc   : > { %1214 = vmatpush.bf16.msra.mxu3 %v2414_v53  ;;  %3079 = vrcp.f32 %v907_v36  ;;  %v919_v46 = vand.u32 2147483648, %v907_v36  ;;  %vm913_vm5 = vweird.f32 %v907_v36  ;;  %v917_v53 = vand.u32 2147483647, %v907_v36  ;;  %v2553_v14 = vld [vmem:[%s4293_s5 + $0xb0] sm:$0xf] }
 0x1cd   : > { %1173 = vmatpush.bf16.msra.mxu0 %v2338_v61  ;;  %v904_v61 = vstv %s903_s28  ;;  %v2950_v15 = vld [vmem:[%s4293_s5 + $0xb4] sm:$0xf0]  ;;  %v2499_v18 = vld [vmem:[%s4293_s5 + $0x48] sm:$0xf0]  ;;  %v2481_v21 = vld [vmem:[%s4293_s5 + $0x20] sm:$0xf] }
 0x1ce   : > { %1187 = vmatpush.bf16.msra.mxu1 %v2402_v1  ;;  %1200 = vmatpush.bf16.msra.mxu2 %v2350_v10  ;;  %v920_v55 = vor.u32 1.1754944e-38, %v919_v46  ;;  %vm918_vm8 = vcmp.eq.f32.partialorder %v917_v53, 8.507059e+37  ;;  %v2932_v22 = vld [vmem:[%s4293_s5 + $0x24] sm:$0xf0]  ;;  %v2545_v26 = vld [vmem:[%s4293_s5 + $0xa0] sm:$0xf] }
 0x1cf   : > { %v2933_v30 = vld [vmem:[%s4293_s5 + $0x34] sm:$0xf]  ;;  %v2491_v31 = vld [vmem:[%s4293_s5 + $0x38] sm:$0xf0]  ;;  %v2473_v5 = vld [vmem:[%s4293_s5 + $0x10] sm:$0xf] }
 0x1d0   : > { %1215 = vmatpush.bf16.msra.mxu3 %v2406_v11  ;;  %v2490_v11 = vor.u32 %v2934_v9, %v2489_v8  ;;  %v2930_v33 = vld [vmem:[%s4293_s5 + $0x14] sm:$0xf0]  ;;  %v2931_v39 = vld [vmem:[%s4293_s5 + $0x24] sm:$0xf]  ;;  %v2529_v53 = vld [vmem:[%s4293_s5 + $0x80] sm:$0xf] }
 0x1d1   : > { %1445 = vmatpush.bf16.msrb.mxu0 %v2522_v0  ;;  %v2474_v34 = vor.u32 %v2930_v33, %v2473_v5  ;;  %v2946_v37 = vld [vmem:[%s4293_s5 + $0x94] sm:$0xf0]  ;;  %v2957_v47 = vld [vmem:[%s4293_s5 + $0xf4] sm:$0xf]  ;;  %v2587_v12 = vld [vmem:[%s4293_s5 + $0xf8] sm:$0xf0] }
 0x1d2   : > { %1459 = vmatpush.bf16.msrb.mxu1 %v2586_v4  ;;  %1201 = vmatpush.bf16.msra.mxu2 %v2342_v23  ;;  %v3080_v43 = vpop.eup %3079  ;;  %v2960_v4 = vld [vmem:[%s4293_s5 + $0x104] sm:$0xf0]  ;;  %v2482_v23 = vor.u32 %v2932_v22, %v2481_v21  ;;  %v2595_v35 = vld [vmem:[%s4293_s5 + $0x108] sm:$0xf0]  ;;  %v2590_v22 = vor.u32 %v2957_v47, %v2587_v12  ;;  %v2645_v12 = vld [vmem:[%s4297_s9 + $0x58] sm:$0xf0] }
 0x1d3   : > { %v909_v45 = vmul.f32 %v3080_v43, %v907_v36  ;;  %vm914_vm6 = vweird.f32 %v3080_v43  ;;  %v2594_v10 = vor.u32 %v2960_v4, %v2593_v3  ;;  %v2537_v36 = vld [vmem:[%s4293_s5 + $0x90] sm:$0xf]  ;;  %v2467_v3 = vld [vmem:[%s4293_s5 + $0x8] sm:$0xf0]  ;;  %v3006_v33 = vld [vmem:[%s4297_s9 + $0x64] sm:$0xf0] }
 0x1d4   : > { %1487 = vmatpush.bf16.msrb.mxu3 %v2526_v16  ;;  %vm915_vm7 = vmor %vm913_vm5, %vm914_vm6  ;;  %v2935_v16 = vld [vmem:[%s4293_s5 + $0x44] sm:$0xf]  ;;  %v2579_v56 = vld [vmem:[%s4293_s5 + $0xe8] sm:$0xf0]  ;;  %vm1763_vm13 = vcmask 1041408   ;;  %vm1759_vm14 = vcmask 949248  }
 0x1d5   : > { %1446 = vmatpush.bf16.msrb.mxu0 %v2514_v17  ;;  %v910_v52 = vsub.f32 1.0, %v909_v45  ;;  %v2554_v17 = vor.u32 %v2950_v15, %v2553_v14  ;;  %vm2053_vm15 = vcmask 285696  }
 0x1d6   : > { %1460 = vmatpush.bf16.msrb.mxu1 %v2578_v20  ;;  %1480 = vmatpush.bf16.msrb.mxu2 %v2594_v10  ;;  %v2502_v20 = vor.u32 %v2935_v16, %v2499_v18 }
 0x1d7   : > { %v911_v54 = vmul.f32 %v3080_v43, %v910_v52 }
 0x1d8   : > { %1488 = vmatpush.bf16.msrb.mxu3 %v2518_v28  ;;  %v2948_v28 = vld [vmem:[%s4293_s5 + $0xa4] sm:$0xf0] }
 0x1d9   : > { %1447 = vmatpush.bf16.msrb.mxu0 %v2506_v29  ;;  %v912_v57 = vadd.f32 %v3080_v43, %v911_v54  ;;  %v2546_v29 = vor.u32 %v2948_v28, %v2545_v26  ;;  %v2944_v54 = vld [vmem:[%s4293_s5 + $0x84] sm:$0xf0] }
 0x1da   : > { %1461 = vmatpush.bf16.msrb.mxu1 %v2570_v32  ;;  %v2494_v32 = vor.u32 %v2933_v30, %v2491_v31  ;;  %v3008_v30 = vld [vmem:[%s4297_s9 + $0x74] sm:$0xf0] }
 0x1db   : > { %v916_v63 = vsel %vm915_vm7, %v3080_v43, %v912_v57  ;;  %v2928_v43 = vld [vmem:[%s4293_s5 + $0x4] sm:$0xf0] }
 0x1dc   : > { %1489 = vmatpush.bf16.msrb.mxu3 %v2510_v40  ;;  %v921_v0 = vsel %vm918_vm8, %v920_v55, %v916_v63  ;;  %v2538_v40 = vor.u32 %v2946_v37, %v2537_v36  ;;  %v2929_v55 = vld [vmem:[%s4293_s5 + $0x14] sm:$0xf]  ;;  %v2571_v36 = vld [vmem:[%s4293_s5 + $0xd8] sm:$0xf0] }
 0x1dd   : > { %1448 = vmatpush.bf16.msrb.mxu0 %v2498_v41  ;;  %v3689_v1 = vmul.f32 %v921_v0, %v904_v61  ;;  %v923_v2 = vmul.f32 %v921_v0, %v906_v62  ;;  %v2483_v41 = vld [vmem:[%s4293_s5 + $0x28] sm:$0xf0]  ;;  %v2530_v61 = vor.u32 %v2944_v54, %v2529_v53  ;;  %v2475_v62 = vld [vmem:[%s4293_s5 + $0x18] sm:$0xf0] }
 0x1de   : > { %1462 = vmatpush.bf16.msrb.mxu1 %v2562_v42  ;;  %v2465_v42 = vld [vmem:[%s4293_s5] sm:$0xf]  ;;  %v2486_v45 = vor.u32 %v2931_v39, %v2483_v41  ;;  %v2478_v63 = vor.u32 %v2929_v55, %v2475_v62  ;;  %v2949_v55 = vld [vmem:[%s4293_s5 + $0xb4] sm:$0xf]  ;;  %v2661_v62 = vld [vmem:[%s4297_s9 + $0x78] sm:$0xf0] }
 0x1df   : > { %v924_v7 = vmul.f32 %v3689_v1, %v3689_v1  ;;  %v2466_v46 = vor.u32 %v2928_v43, %v2465_v42  ;;  %v938_v9 = vsub.f32 %v800_v27, %v3689_v1  ;;  %v939_v10 = vsub.f32 %v801_v50, %v3689_v1  ;;  %v2951_v42 = vld [vmem:[%s4293_s5 + $0xc4] sm:$0xf]  ;;  %v2563_v43 = vld [vmem:[%s4293_s5 + $0xc8] sm:$0xf0] }
 0x1e0   : > { %1490 = vmatpush.bf16.msrb.mxu3 %v2502_v20  ;;  %v941_v50 = vsub.f32 %v803_v48, %v3689_v1  ;;  %v944_v58 = vsub.f32 %v806_v51, %v3689_v1  ;;  %v2959_v20 = vld [vmem:[%s4293_s5 + $0x104] sm:$0xf] }
 0x1e1   : > { %v925_v13 = vsub.f32 %v923_v2, %v924_v7  ;;  %1449 = vmatpush.bf16.msrb.mxu0 %v2490_v11  ;;  %v2927_v2 = vld [vmem:[%s4293_s5 + $0x4] sm:$0xf]  ;;  %v942_v11 = vsub.f32 %v804_v6, %v3689_v1  ;;  %v940_v6 = vsub.f32 %v802_v38, %v3689_v1 }
 0x1e2   : > { %1463 = vmatpush.bf16.msrb.mxu1 %v2554_v17  ;;  %v2470_v7 = vor.u32 %v2927_v2, %v2467_v3  ;;  %v2955_v51 = vld [vmem:[%s4293_s5 + $0xe4] sm:$0xf] }
 0x1e3   : > { %v926_v19 = vmax.f32 %v925_v13, 0.0  ;;  %v943_v13 = vsub.f32 %v805_v60, %v3689_v1  ;;  %v945_v60 = vsub.f32 %v807_v59, %v3689_v1  ;;  %v2598_v59 = vor.u32 %v2959_v20, %v2595_v35  ;;  %v2947_v3 = vld [vmem:[%s4293_s5 + $0xa4] sm:$0xf]  ;;  %v2637_v35 = vld [vmem:[%s4297_s9 + $0x48] sm:$0xf0] }
 0x1e4   : > { %1491 = vmatpush.bf16.msrb.mxu3 %v2494_v32  ;;  %v2582_v31 = vor.u32 %v2955_v51, %v2579_v56  ;;  %v2651_v32 = vld [vmem:[%s4297_s9 + $0x60] sm:$0xf]  ;;  %v2629_v56 = vld [vmem:[%s4297_s9 + $0x38] sm:$0xf0] }
 0x1e5   : > { %v927_v24 = vadd.f32 1e-05, %v926_v19  ;;  %1450 = vmatpush.bf16.msrb.mxu0 %v2482_v23  ;;  %v2652_v37 = vor.u32 %v3006_v33, %v2651_v32  ;;  %v2621_v32 = vld [vmem:[%s4297_s9 + $0x28] sm:$0xf0] }
 0x1e6   : > { %1464 = vmatpush.bf16.msrb.mxu1 %v2546_v29  ;;  %v2659_v29 = vld [vmem:[%s4297_s9 + $0x70] sm:$0xf] }
 0x1e7   : > { %3081 = vrsqrt.f32 %v927_v24  ;;  %vm934_vm9 = vweird.f32 %v927_v24  ;;  %v2660_v5 = vor.u32 %v3008_v30, %v2659_v29  ;;  %v2619_v29 = vld [vmem:[%s4297_s9 + $0x20] sm:$0xf]  ;;  %v2998_v30 = vld [vmem:[%s4297_s9 + $0x24] sm:$0xf0] }
 0x1e8   : > { %1492 = vmatpush.bf16.msrb.mxu3 %v2486_v45 }
 0x1e9   : > { %1451 = vmatpush.bf16.msrb.mxu0 %v2474_v34  ;;  %v2953_v34 = vld [vmem:[%s4293_s5 + $0xd4] sm:$0xf] }
 0x1ea   : > { %1465 = vmatpush.bf16.msrb.mxu1 %v2538_v40  ;;  %v2574_v41 = vor.u32 %v2953_v34, %v2571_v36  ;;  %v2715_v34 = vld [vmem:[%s4297_s9 + $0xe0] sm:$0xf]  ;;  %v3022_v36 = vld [vmem:[%s4297_s9 + $0xe4] sm:$0xf0] }
 0x1ec   : > { %1493 = vmatpush.bf16.msrb.mxu3 %v2478_v63 }
 0x1ed   : > { %v3082_v52 = vpop.eup %3081  ;;  %1452 = vmatpush.bf16.msrb.mxu0 %v2466_v46 }
 0x1ee   : > { %v929_v57 = vmul.f32 %v3082_v52, %v927_v24  ;;  %1466 = vmatpush.bf16.msrb.mxu1 %v2530_v61  ;;  %vm935_vm10 = vweird.f32 %v3082_v52  ;;  %v3007_v61 = vld [vmem:[%s4297_s9 + $0x74] sm:$0xf] }
 0x1ef   : > { %vm936_vm11 = vmor %vm934_vm9, %vm935_vm10 }
 0x1f0   : > { %v930_v0 = vmul.f32 %v3082_v52, %v929_v57  ;;  %1494 = vmatpush.bf16.msrb.mxu3 %v2470_v7  ;;  %v2555_v57 = vld [vmem:[%s4293_s5 + $0xb8] sm:$0xf0]  ;;  %v2664_v7 = vor.u32 %v3007_v61, %v2661_v62  ;;  %v3019_v61 = vld [vmem:[%s4297_s9 + $0xd4] sm:$0xf] }
 0x1f1   : > { %v2709_v62 = vld [vmem:[%s4297_s9 + $0xd8] sm:$0xf0] }
 0x1f2   : > { %v931_v4 = vmul.f32 0.5, %v930_v0  ;;  %v2558_v0 = vor.u32 %v2949_v55, %v2555_v57  ;;  %v3020_v55 = vld [vmem:[%s4297_s9 + $0xd4] sm:$0xf0] }
 0x1f4   : > { %v932_v8 = vsub.f32 1.5, %v931_v4  ;;  %v2547_v4 = vld [vmem:[%s4293_s5 + $0xa8] sm:$0xf0] }
 0x1f6   : > { %v933_v14 = vmul.f32 %v3082_v52, %v932_v8  ;;  %v3005_v8 = vld [vmem:[%s4297_s9 + $0x64] sm:$0xf] }
 0x1f8   : > { %v937_v15 = vsel %vm936_vm11, %v3082_v52, %v933_v14  ;;  %v2566_v52 = vor.u32 %v2951_v42, %v2563_v43  ;;  %v2611_v42 = vld [vmem:[%s4297_s9 + $0x10] sm:$0xf]  ;;  %v2996_v43 = vld [vmem:[%s4297_s9 + $0x14] sm:$0xf0] }
 0x1f9   : > { %v946_v16 = vmul.f32 %v938_v9, %v937_v15  ;;  %v947_v17 = vmul.f32 %v939_v10, %v937_v15  ;;  %v950_v18 = vmul.f32 %v942_v11, %v937_v15  ;;  %v951_v25 = vmul.f32 %v943_v13, %v937_v15  ;;  %v2653_v9 = vld [vmem:[%s4297_s9 + $0x68] sm:$0xf0]  ;;  %v2945_v11 = vld [vmem:[%s4293_s5 + $0x94] sm:$0xf]  ;;  %v2539_v13 = vld [vmem:[%s4293_s5 + $0x98] sm:$0xf0] }
 0x1fa   : > { %v948_v1 = vmul.f32 %v940_v6, %v937_v15  ;;  %v949_v24 = vmul.f32 %v941_v50, %v937_v15  ;;  %v952_v26 = vmul.f32 %v944_v58, %v937_v15  ;;  %v953_v28 = vmul.f32 %v945_v60, %v937_v15  ;;  %v2635_v50 = vld [vmem:[%s4297_s9 + $0x40] sm:$0xf]  ;;  %v3002_v58 = vld [vmem:[%s4297_s9 + $0x44] sm:$0xf0]  ;;  %v3001_v60 = vld [vmem:[%s4297_s9 + $0x44] sm:$0xf] }
 0x1fb   : > { %v954_v27 = vpack.c.bf16 %v947_v17, %v946_v16  ;;  %v956_v19 = vpack.c.bf16 %v951_v25, %v950_v18  ;;  %v2550_v10 = vor.u32 %v2947_v3, %v2547_v4  ;;  %v2656_v14 = vor.u32 %v3005_v8, %v2653_v9  ;;  %v2943_v16 = vld [vmem:[%s4293_s5 + $0x84] sm:$0xf]  ;;  %v2531_v17 = vld [vmem:[%s4293_s5 + $0x88] sm:$0xf0]  ;;  %v2643_v25 = vld [vmem:[%s4297_s9 + $0x50] sm:$0xf] }
 0x1fc   : > { %v955_v39 = vpack.c.bf16 %v949_v24, %v948_v1  ;;  %v957_v40 = vpack.c.bf16 %v953_v28, %v952_v26  ;;  %v2542_v15 = vor.u32 %v2945_v11, %v2539_v13  ;;  %v2534_v18 = vor.u32 %v2943_v16, %v2531_v17  ;;  %v2993_v3 = vld [vmem:[%s4297_s9 + $0x4] sm:$0xf]  ;;  %v2781_v8 = vld [vmem:[%s4296_s8 + $0x70] sm:$0xf]  ;;  %v2976_v9 = vld [vmem:[%s4296_s8 + $0x74] sm:$0xf0] }
 0x1fd   : > { %v998_v38 = vunpack.c.l.b16 %v954_v27  ;;  %v999_v21 = vunpack.c.h.b16 %v954_v27  ;;  %v1000_v44 = vunpack.c.l.b16 %v956_v19  ;;  %v1001_v48 = vunpack.c.h.b16 %v956_v19  ;;  %v3004_v27 = vld [vmem:[%s4297_s9 + $0x54] sm:$0xf0]  ;;  %v3003_v19 = vld [vmem:[%s4297_s9 + $0x54] sm:$0xf]  ;;  %v3018_v17 = vld [vmem:[%s4297_s9 + $0xc4] sm:$0xf0] }
 0x1fe   : > { %v1265_v45 = vunpack.c.h.b16 %v955_v39  ;;  %v1267_v46 = vunpack.c.h.b16 %v957_v40  ;;  %v1264_v53 = vunpack.c.l.b16 %v955_v39  ;;  %v1266_v54 = vunpack.c.l.b16 %v957_v40  ;;  %v2717_v40 = vld [vmem:[%s4297_s9 + $0xe8] sm:$0xf0]  ;;  %v2975_v13 = vld [vmem:[%s4296_s8 + $0x74] sm:$0xf] }
 0x1ff   : > { %v1002_v23 = vpack.c.b16 %v1000_v44, %v998_v38  ;;  %v1003_v49 = vpack.c.b16 %v1001_v48, %v999_v21  ;;  %v2644_v47 = vor.u32 %v3004_v27, %v2643_v25  ;;  %v2648_v6 = vor.u32 %v3003_v19, %v2645_v12  ;;  %v1603_v21 = vld [vmem:[%s4297_s9 + $0xf0] sm:$0x33]  ;;  %v3000_v48 = vld [vmem:[%s4297_s9 + $0x34] sm:$0xf0]  ;;  %v2701_v25 = vld [vmem:[%s4297_s9 + $0xc8] sm:$0xf0] }
 0x200   : > { %v1269_v63 = vpack.c.b16 %v1267_v46, %v1265_v45  ;;  %v1268_v2 = vpack.c.b16 %v1266_v54, %v1264_v53  ;;  %v2636_v20 = vor.u32 %v3002_v58, %v2635_v50  ;;  %v2640_v38 = vor.u32 %v3001_v60, %v2637_v35  ;;  %v2627_v44 = vld [vmem:[%s4297_s9 + $0x30] sm:$0xf]  ;;  %v2995_v45 = vld [vmem:[%s4297_s9 + $0x14] sm:$0xf]  ;;  %v2974_v12 = vld [vmem:[%s4296_s8 + $0x64] sm:$0xf0] }
 0x201   : > { %1174 = vmatmul.bf16.vlgmr.msra.gmra.mxu0 %v1002_v23  ;;  %1202 = vmatmul.bf16.vlgmr.msra.gmra.mxu2 %v1002_v23  ;;  %v1695_v23 = vunpack.c.l.b16 %v1603_v21  ;;  %v2628_v51 = vor.u32 %v3000_v48, %v2627_v44  ;;  %v2716_v39 = vor.u32 %v3022_v36, %v2715_v34  ;;  %v2612_v46 = vor.u32 %v2996_v43, %v2611_v42  ;;  %v2707_v54 = vld [vmem:[%s4297_s9 + $0xd0] sm:$0xf]  ;;  %v2775_v58 = vld [vmem:[%s4296_s8 + $0x68] sm:$0xf0]  ;;  %v2693_v44 = vld [vmem:[%s4297_s9 + $0xb8] sm:$0xf0] }
 0x202   : > { %1501 = vmatpush.bf16.msra.mxu2 %v2590_v22  ;;  %1188 = vmatmul.bf16.vlgmr.msra.gmra.mxu1 %v1003_v49  ;;  %v2999_v22 = vld [vmem:[%s4297_s9 + $0x34] sm:$0xf]  ;;  %v2708_v57 = vor.u32 %v3020_v55, %v2707_v54  ;;  %v2782_v11 = vor.u32 %v2976_v9, %v2781_v8  ;;  %v2691_v60 = vld [vmem:[%s4297_s9 + $0xb0] sm:$0xf]  ;;  %v2759_v36 = vld [vmem:[%s4296_s8 + $0x48] sm:$0xf0] }
 0x203   : > { %1216 = vmatmul.bf16.vlgmr.msra.gmra.mxu3 %v1003_v49  ;;  %1522 = vmatpush.bf16.msra.mxu0 %v2598_v59  ;;  %v2632_v59 = vor.u32 %v2999_v22, %v2629_v56  ;;  %v1727_v1 = vpack.c.b16 %v1695_v23, %v1695_v23  ;;  %v2765_v22 = vld [vmem:[%s4296_s8 + $0x50] sm:$0xf]  ;;  %v2972_v23 = vld [vmem:[%s4296_s8 + $0x54] sm:$0xf0]  ;;  %v2767_v56 = vld [vmem:[%s4296_s8 + $0x58] sm:$0xf0] }
 0x204   : > { %1770 = vmatpush.bf16.msra.mxu1 %v2660_v5  ;;  %v2997_v5 = vld [vmem:[%s4297_s9 + $0x24] sm:$0xf]  ;;  %v3011_v43 = vld [vmem:[%s4297_s9 + $0x94] sm:$0xf]  ;;  %v2845_v8 = vld [vmem:[%s4296_s8 + $0xf0] sm:$0xf] }
 0x205   : > { %v1765_v26 = vsel %vm1763_vm13, %v1727_v1, 0  ;;  %v2624_v33 = vor.u32 %v2997_v5, %v2621_v32  ;;  %v2970_v5 = vld [vmem:[%s4296_s8 + $0x44] sm:$0xf0]  ;;  %v2969_v32 = vld [vmem:[%s4296_s8 + $0x44] sm:$0xf] }
 0x206   : > { %1502 = vmatpush.bf16.msra.mxu2 %v2582_v31  ;;  %1784 = vmatpush.bf16.msra.mxu3 %v1765_v26  ;;  %v2620_v31 = vor.u32 %v2998_v30, %v2619_v29  ;;  %v3013_v26 = vld [vmem:[%s4297_s9 + $0xa4] sm:$0xf]  ;;  %v2967_v54 = vld [vmem:[%s4296_s8 + $0x34] sm:$0xf]  ;;  %v2992_v9 = vld [vmem:[%s4296_s8 + $0xf4] sm:$0xf0] }
 0x208   : > { %1771 = vmatpush.bf16.msra.mxu1 %v2652_v37  ;;  %v3021_v37 = vld [vmem:[%s4297_s9 + $0xe4] sm:$0xf] }
 0x20a   : > { %1503 = vmatpush.bf16.msra.mxu2 %v2574_v41  ;;  %v2720_v41 = vor.u32 %v3021_v37, %v2717_v40  ;;  %1785 = vmatpush.bf16.msra.mxu3 %v2716_v39  ;;  %v2675_v37 = vld [vmem:[%s4297_s9 + $0x90] sm:$0xf]  ;;  %v3012_v39 = vld [vmem:[%s4297_s9 + $0x94] sm:$0xf0] }
 0x20b   : > { %v2676_v42 = vor.u32 %v3012_v39, %v2675_v37 }
 0x20c   : > { %1772 = vmatpush.bf16.msra.mxu1 %v2644_v47  ;;  %v2773_v47 = vld [vmem:[%s4296_s8 + $0x60] sm:$0xf] }
 0x20d   : > { %v2774_v50 = vor.u32 %v2974_v12, %v2773_v47  ;;  %v2837_v12 = vld [vmem:[%s4296_s8 + $0xe0] sm:$0xf] }
 0x20e   : > { %1504 = vmatpush.bf16.msra.mxu2 %v2566_v52  ;;  %v2613_v52 = vld [vmem:[%s4297_s9 + $0x18] sm:$0xf0]  ;;  %1786 = vmatpush.bf16.msra.mxu3 %v2708_v57 }
 0x20f   : > { %v2616_v53 = vor.u32 %v2995_v45, %v2613_v52  ;;  %v2677_v45 = vld [vmem:[%s4297_s9 + $0x98] sm:$0xf0]  ;;  %v2749_v52 = vld [vmem:[%s4296_s8 + $0x30] sm:$0xf] }
 0x210   : > { %1773 = vmatpush.bf16.msra.mxu1 %v2636_v20  ;;  %v3016_v20 = vld [vmem:[%s4297_s9 + $0xb4] sm:$0xf0]  ;;  %v2751_v57 = vld [vmem:[%s4296_s8 + $0x38] sm:$0xf0] }
 0x211   : > { %1453 = vmatmul.bf16.vlgmr.msrb.gmra.mxu0 %v1003_v49  ;;  %2599 = vmatmul.msk.bf16.vlgmr.msrb.gmra.mxu2 %vm1441_vm12, %v1269_v63 }
 0x212   : > { %1505 = vmatpush.bf16.msra.mxu2 %v2558_v0  ;;  %1467 = vmatmul.bf16.vlgmr.msrb.gmra.mxu1 %v1268_v2  ;;  %v2603_v0 = vld [vmem:[%s4297_s9] sm:$0xf] }
 0x213   : > { %1495 = vmatmul.bf16.vlgmr.msrb.gmra.mxu3 %v1003_v49  ;;  %1798 = vmatpush.bf16.msrb.mxu0 %v2664_v7  ;;  %v1696_v49 = vunpack.c.h.b16 %v1603_v21  ;;  %v2605_v7 = vld [vmem:[%s4297_s9 + $0x8] sm:$0xf0]  ;;  %v3015_v21 = vld [vmem:[%s4297_s9 + $0xb4] sm:$0xf] }
 0x214   : > { %1774 = vmatpush.bf16.msra.mxu1 %v2628_v51  ;;  %v2696_v48 = vor.u32 %v3015_v21, %v2693_v44  ;;  %v2971_v51 = vld [vmem:[%s4296_s8 + $0x54] sm:$0xf] }
 0x215   : > { %v1728_v24 = vpack.c.b16 %v1696_v49, %v1696_v49  ;;  %v2766_v49 = vor.u32 %v2972_v23, %v2765_v22  ;;  %v2770_v1 = vor.u32 %v2971_v51, %v2767_v56  ;;  %v2963_v44 = vld [vmem:[%s4296_s8 + $0x14] sm:$0xf]  ;;  %v4161_v22 = vld [vmem:[%s4295_s7] sm:$0x3]  ;;  %v2988_v51 = vld [vmem:[%s4296_s8 + $0xd4] sm:$0xf0] }
 0x216   : > { %1506 = vmatpush.bf16.msra.mxu2 %v2550_v10  ;;  %v2608_v10 = vor.u32 %v2993_v3, %v2605_v7  ;;  %v2669_v3 = vld [vmem:[%s4297_s9 + $0x88] sm:$0xf0] }
 0x217   : > { %1799 = vmatpush.bf16.msrb.mxu0 %v2656_v14  ;;  %v1768_v28 = vsel %vm1763_vm13, %v1728_v24, 0  ;;  %v2783_v14 = vld [vmem:[%s4296_s8 + $0x78] sm:$0xf0]  ;;  %v3014_v24 = vld [vmem:[%s4297_s9 + $0xa4] sm:$0xf0] }
 0x218   : > { %1775 = vmatpush.bf16.msra.mxu1 %v2620_v31  ;;  %v2786_v16 = vor.u32 %v2975_v13, %v2783_v14  ;;  %v2757_v31 = vld [vmem:[%s4296_s8 + $0x40] sm:$0xf]  ;;  %v2847_v13 = vld [vmem:[%s4296_s8 + $0xf8] sm:$0xf0] }
 0x219   : > { %v2758_v34 = vor.u32 %v2970_v5, %v2757_v31  ;;  %v2741_v14 = vld [vmem:[%s4296_s8 + $0x20] sm:$0xf]  ;;  %v2961_v31 = vld [vmem:[%s4296_s8 + $0x4] sm:$0xf]  ;;  %v1258_v5 = vperm.slane %v4161_v22, 0 }
 0x21a   : > { %1507 = vmatpush.bf16.msra.mxu2 %v2542_v15  ;;  %v2699_v15 = vld [vmem:[%s4297_s9 + $0xc0] sm:$0xf] }
 0x21b   : > { %1800 = vmatpush.bf16.msrb.mxu0 %v2648_v6  ;;  %v2700_v27 = vor.u32 %v3018_v17, %v2699_v15  ;;  %v2973_v6 = vld [vmem:[%s4296_s8 + $0x64] sm:$0xf]  ;;  %v2966_v15 = vld [vmem:[%s4296_s8 + $0x24] sm:$0xf0] }
 0x21c   : > { %1776 = vmatpush.bf16.msra.mxu1 %v2612_v46  ;;  %v2778_v35 = vor.u32 %v2973_v6, %v2775_v58  ;;  %v2680_v46 = vor.u32 %v3011_v43, %v2677_v45  ;;  %v2990_v6 = vld [vmem:[%s4296_s8 + $0xe4] sm:$0xf0]  ;;  %v2985_v43 = vld [vmem:[%s4296_s8 + $0xc4] sm:$0xf] }
 0x21d   : > { %1787 = vmatpush.bf16.msra.mxu3 %v2700_v27  ;;  %v2743_v27 = vld [vmem:[%s4296_s8 + $0x28] sm:$0xf0]  ;;  %v2838_v58 = vor.u32 %v2990_v6, %v2837_v12 }
 0x21e   : > { %1508 = vmatpush.bf16.msra.mxu2 %v2534_v18  ;;  %v3017_v18 = vld [vmem:[%s4297_s9 + $0xc4] sm:$0xf] }
 0x21f   : > { %1801 = vmatpush.bf16.msrb.mxu0 %v2640_v38  ;;  %v2704_v19 = vor.u32 %v3017_v18, %v2701_v25  ;;  %v2692_v38 = vor.u32 %v3016_v20, %v2691_v60  ;;  %v2742_v18 = vor.u32 %v2966_v15, %v2741_v14  ;;  %v2965_v25 = vld [vmem:[%s4296_s8 + $0x24] sm:$0xf]  ;;  %v2839_v60 = vld [vmem:[%s4296_s8 + $0xe8] sm:$0xf0] }
 0x220   : > { %v2746_v47 = vor.u32 %v2965_v25, %v2743_v27  ;;  %v2980_v25 = vld [vmem:[%s4296_s8 + $0x94] sm:$0xf0]  ;;  %v2979_v27 = vld [vmem:[%s4296_s8 + $0x94] sm:$0xf] }
 0x221   : > { %1509 = vmatmul.bf16.vlgmr.msra.gmra.mxu2 %v1268_v2  ;;  %2600 = vmatmul.msk.bf16.vlgmr.msra.gmra.mxu0 %vm1441_vm12, %v1269_v63  ;;  %v2712_v63 = vor.u32 %v3019_v61, %v2709_v62  ;;  %v2994_v2 = vld [vmem:[%s4297_s9 + $0x4] sm:$0xf0]  ;;  %v2667_v61 = vld [vmem:[%s4297_s9 + $0x80] sm:$0xf] }
 0x222   : > { %1812 = vmatpush.bf16.msrb.mxu2 %v1768_v28  ;;  %v2604_v4 = vor.u32 %v2994_v2, %v2603_v0  ;;  %1788 = vmatpush.bf16.msra.mxu3 %v2692_v38  ;;  %v2685_v28 = vld [vmem:[%s4297_s9 + $0xa8] sm:$0xf0]  ;;  %v3010_v62 = vld [vmem:[%s4297_s9 + $0x84] sm:$0xf0]  ;;  %v3009_v2 = vld [vmem:[%s4297_s9 + $0x84] sm:$0xf] }
 0x223   : > { %1802 = vmatpush.bf16.msrb.mxu0 %v2632_v59  ;;  %v2683_v59 = vld [vmem:[%s4297_s9 + $0xa0] sm:$0xf]  ;;  %v2688_v30 = vor.u32 %v3013_v26, %v2685_v28  ;;  %v2668_v0 = vor.u32 %v3010_v62, %v2667_v61  ;;  %v2672_v7 = vor.u32 %v3009_v2, %v2669_v3  ;;  %v2964_v38 = vld [vmem:[%s4296_s8 + $0x14] sm:$0xf0]  ;;  %v2831_v26 = vld [vmem:[%s4296_s8 + $0xd8] sm:$0xf0] }
 0x224   : > { %1777 = vmatpush.bf16.msra.mxu1 %v2604_v4  ;;  %v2684_v29 = vor.u32 %v3014_v24, %v2683_v59  ;;  %v2987_v24 = vld [vmem:[%s4296_s8 + $0xd4] sm:$0xf]  ;;  %v2805_v2 = vld [vmem:[%s4296_s8 + $0xa0] sm:$0xf]  ;;  %v2982_v3 = vld [vmem:[%s4296_s8 + $0xa4] sm:$0xf0] }
 0x225   : > { %v2834_v28 = vor.u32 %v2987_v24, %v2831_v26  ;;  %v2983_v62 = vld [vmem:[%s4296_s8 + $0xb4] sm:$0xf]  ;;  %v2806_v14 = vor.u32 %v2982_v3, %v2805_v2 }
 0x226   : > { %1813 = vmatpush.bf16.msrb.mxu2 %v2720_v41  ;;  %1789 = vmatpush.bf16.msra.mxu3 %v2684_v29  ;;  %v2762_v41 = vor.u32 %v2969_v32, %v2759_v36  ;;  %v2725_v29 = vld [vmem:[%s4296_s8] sm:$0xf]  ;;  %v2727_v36 = vld [vmem:[%s4296_s8 + $0x8] sm:$0xf0] }
 0x227   : > { %1803 = vmatpush.bf16.msrb.mxu0 %v2624_v33  ;;  %v2730_v39 = vor.u32 %v2961_v31, %v2727_v36 }
 0x228   : > { %1986 = vmatpush.bf16.msrb.mxu1 %v2782_v11  ;;  %v2846_v11 = vor.u32 %v2992_v9, %v2845_v8 }
 0x22a   : > { %1814 = vmatpush.bf16.msrb.mxu2 %v2712_v63  ;;  %1790 = vmatpush.bf16.msra.mxu3 %v2676_v42  ;;  %v2754_v63 = vor.u32 %v2967_v54, %v2751_v57  ;;  %v2986_v42 = vld [vmem:[%s4296_s8 + $0xc4] sm:$0xf0]  ;;  %v2813_v54 = vld [vmem:[%s4296_s8 + $0xb0] sm:$0xf] }
 0x22b   : > { %1804 = vmatpush.bf16.msrb.mxu0 %v2616_v53  ;;  %v2968_v53 = vld [vmem:[%s4296_s8 + $0x34] sm:$0xf0] }
 0x22c   : > { %1987 = vmatpush.bf16.msrb.mxu1 %v2774_v50  ;;  %v2750_v55 = vor.u32 %v2968_v53, %v2749_v52  ;;  %v2989_v50 = vld [vmem:[%s4296_s8 + $0xe4] sm:$0xf] }
 0x22d   : > { %v2842_v20 = vor.u32 %v2989_v50, %v2839_v60 }
 0x22e   : > { %1815 = vmatpush.bf16.msrb.mxu2 %v2704_v19  ;;  %1791 = vmatpush.bf16.msra.mxu3 %v2668_v0 }
 0x22f   : > { %1805 = vmatpush.bf16.msrb.mxu0 %v2608_v10  ;;  %v2991_v10 = vld [vmem:[%s4296_s8 + $0xf4] sm:$0xf] }
 0x230   : > { %1988 = vmatpush.bf16.msrb.mxu1 %v2766_v49  ;;  %v2850_v17 = vor.u32 %v2991_v10, %v2847_v13  ;;  %v2829_v49 = vld [vmem:[%s4296_s8 + $0xd0] sm:$0xf]  ;;  %v2807_v10 = vld [vmem:[%s4296_s8 + $0xa8] sm:$0xf0] }
 0x232   : > { %1816 = vmatpush.bf16.msrb.mxu2 %v2696_v48  ;;  %2000 = vmatpush.bf16.msrb.mxu3 %v2846_v11  ;;  %v2735_v48 = vld [vmem:[%s4296_s8 + $0x18] sm:$0xf0] }
 0x233   : > { %2014 = vmatpush.bf16.msra.mxu0 %v2786_v16  ;;  %v2738_v23 = vor.u32 %v2963_v44, %v2735_v48  ;;  %v2791_v44 = vld [vmem:[%s4296_s8 + $0x88] sm:$0xf0] }
 0x234   : > { %1989 = vmatpush.bf16.msrb.mxu1 %v2758_v34 }
 0x236   : > { %1817 = vmatpush.bf16.msrb.mxu2 %v2688_v30  ;;  %2001 = vmatpush.bf16.msrb.mxu3 %v2838_v58  ;;  %v2962_v30 = vld [vmem:[%s4296_s8 + $0x4] sm:$0xf0] }
 0x237   : > { %2015 = vmatpush.bf16.msra.mxu0 %v2778_v35  ;;  %v2733_v35 = vld [vmem:[%s4296_s8 + $0x10] sm:$0xf]  ;;  %v2726_v34 = vor.u32 %v2962_v30, %v2725_v29 }
 0x238   : > { %1990 = vmatpush.bf16.msrb.mxu1 %v2750_v55  ;;  %v2734_v21 = vor.u32 %v2964_v38, %v2733_v35  ;;  %v2984_v55 = vld [vmem:[%s4296_s8 + $0xb4] sm:$0xf0]  ;;  %v2978_v38 = vld [vmem:[%s4296_s8 + $0x84] sm:$0xf0] }
 0x239   : > { %v2814_v61 = vor.u32 %v2984_v55, %v2813_v54 }
 0x23a   : > { %1818 = vmatpush.bf16.msrb.mxu2 %v2680_v46  ;;  %v2823_v46 = vld [vmem:[%s4296_s8 + $0xc8] sm:$0xf0] }
 0x23b   : > { %2016 = vmatpush.bf16.msra.mxu0 %v2770_v1  ;;  %v2830_v1 = vor.u32 %v2988_v51, %v2829_v49  ;;  %v2826_v52 = vor.u32 %v2985_v43, %v2823_v46  ;;  %v990_v51 = vld [vmem:[%s4294_s6] sm:$0x3] }
 0x23c   : > { %1991 = vmatpush.bf16.msrb.mxu1 %v2742_v18  ;;  %v2797_v18 = vld [vmem:[%s4296_s8 + $0x90] sm:$0xf]  ;;  %v992_v26 = vperm.slane %v990_v51, 0 }
 0x23d   : > { %2002 = vmatpush.bf16.msrb.mxu3 %v2830_v1  ;;  %v2798_v50 = vor.u32 %v2980_v25, %v2797_v18 }
 0x23e   : > { %1819 = vmatpush.bf16.msrb.mxu2 %v2672_v7  ;;  %v2981_v7 = vld [vmem:[%s4296_s8 + $0xa4] sm:$0xf] }
 0x23f   : > { %2017 = vmatpush.bf16.msra.mxu0 %v2762_v41  ;;  %v2821_v41 = vld [vmem:[%s4296_s8 + $0xc0] sm:$0xf] }
 0x240   : > { %1992 = vmatpush.bf16.msrb.mxu1 %v2734_v21  ;;  %v2822_v45 = vor.u32 %v2986_v42, %v2821_v41  ;;  %v2977_v21 = vld [vmem:[%s4296_s8 + $0x84] sm:$0xf] }
 0x241   : > { %v2794_v24 = vor.u32 %v2977_v21, %v2791_v44 }
 0x242   : > { %2028 = vmatpush.bf16.msra.mxu2 %v2850_v17  ;;  %2003 = vmatpush.bf16.msrb.mxu3 %v2822_v45  ;;  %v2810_v17 = vor.u32 %v2981_v7, %v2807_v10 }
 0x243   : > { %2018 = vmatpush.bf16.msra.mxu0 %v2754_v63  ;;  %v2815_v63 = vld [vmem:[%s4296_s8 + $0xb8] sm:$0xf0] }
 0x244   : > { %1993 = vmatpush.bf16.msrb.mxu1 %v2726_v34  ;;  %v2818_v0 = vor.u32 %v2983_v62, %v2815_v63 }
 0x246   : > { %2029 = vmatpush.bf16.msra.mxu2 %v2842_v20  ;;  %2004 = vmatpush.bf16.msrb.mxu3 %v2814_v61  ;;  %v2789_v20 = vld [vmem:[%s4296_s8 + $0x80] sm:$0xf]  ;;  %v993_v61 = vperm.slane %v990_v51, 1 }
 0x247   : > { %2019 = vmatpush.bf16.msra.mxu0 %v2746_v47  ;;  %v2799_v47 = vld [vmem:[%s4296_s8 + $0x98] sm:$0xf0]  ;;  %v2790_v1 = vor.u32 %v2978_v38, %v2789_v20 }
 0x248   : > { %v2802_v60 = vor.u32 %v2979_v27, %v2799_v47 }
 0x24a   : > { %2030 = vmatpush.bf16.msra.mxu2 %v2834_v28  ;;  %2005 = vmatpush.bf16.msrb.mxu3 %v2806_v14  ;;  %v1259_v28 = vperm.slane %v4161_v22, 1 }
 0x24b   : > { %2020 = vmatpush.bf16.msra.mxu0 %v2738_v23 }
 0x24e   : > { %2031 = vmatpush.bf16.msra.mxu2 %v2826_v52  ;;  %2006 = vmatpush.bf16.msrb.mxu3 %v2798_v50 }
 0x24f   : > { %2021 = vmatpush.bf16.msra.mxu0 %v2730_v39 }
 0x252   : > { %2032 = vmatpush.bf16.msra.mxu2 %v2818_v0  ;;  %2007 = vmatpush.bf16.msrb.mxu3 %v2790_v1 }
 0x256   : > { %2033 = vmatpush.bf16.msra.mxu2 %v2810_v17 }
 0x25a   : > { %2034 = vmatpush.bf16.msra.mxu2 %v2802_v60 }
 0x25e   : > { %2035 = vmatpush.bf16.msra.mxu2 %v2794_v24 }
 0x27e   : > { %v4061_v33 = vpop.f32.mrf.mxu0 }
 0x27f   : > { %v4072_v40 = vpop.f32.mrf.mxu1 }
 0x284   : > { %v4104_v4 = vpop.f32.mrf.mxu2 }
 0x286   : > { %v4124_v16 = vpop.f32.mrf.mxu0  ;;  %v4169_v56 = vpop.f32.mrf.mxu3 }
 0x287   : > { %v4132_v19 = vpop.f32.mrf.mxu1 }
 0x28c   : > { %v4171_v59 = vpop.f32.mrf.mxu2 }
 0x28e   : > { %v1454_v32 = vpop.f32.mrf.mxu0  ;;  %v4225_v8 = vpop.f32.mrf.mxu3 }
 0x28f   : > { %v1468_v37 = vpop.f32.mrf.mxu1  ;;  %v1455_v53 = vadd.f32 %v1454_v32, %v1258_v5  ;;  %v1178_v32 = vadd.f32 %v4124_v16, %v992_v26 }
 0x291   : > { %v1469_v11 = vadd.f32 %v1468_v37, %v1455_v53  ;;  %v1192_v39 = vadd.f32 %v4132_v19, %v1178_v32  ;;  %v1204_v19 = vadd.f32 %v4104_v4, %v993_v61 }
 0x293   : > { %v1531_v45 = vmax.f32 %v1192_v39, 0.0  ;;  %v1218_v63 = vadd.f32 %v4169_v56, %v1204_v19  ;;  %v2042_v56 = vld [vmem:[%s4298_s10] sm:$0x3] }
 0x294   : > { %v1482_v57 = vpop.f32.mrf.mxu2  ;;  %v2044_v27 = vperm.slane %v2042_v56, 0 }
 0x295   : > { %v1483_v12 = vadd.f32 %v1482_v57, %v1469_v11  ;;  %v1530_v2 = vmax.f32 %v1218_v63, 0.0 }
 0x296   : > { %v1456_v9 = vpop.f32.mrf.mxu0  ;;  %v1496_v48 = vpop.f32.mrf.mxu3 }
 0x297   : > { %v1457_v13 = vadd.f32 %v1456_v9, %v1258_v5  ;;  %v1470_v15 = vpop.f32.mrf.mxu1  ;;  %v1535_v23 = vmax.f32 %v1483_v12, 0.0  ;;  %v1176_v5 = vadd.f32 %v4061_v33, %v992_v26  ;;  %v1497_v34 = vadd.f32 %v1496_v48, %v1259_v28 }
 0x298   : > { %v2045_v12 = vperm.slane %v2042_v56, 1 }
 0x299   : > { %v1471_v6 = vadd.f32 %v1470_v15, %v1457_v13  ;;  %v1190_v37 = vadd.f32 %v4072_v40, %v1176_v5  ;;  %v1206_v40 = vadd.f32 %v4171_v59, %v993_v61 }
 0x29b   : > { %v1529_v43 = vmax.f32 %v1190_v37, 0.0  ;;  %v1220_v62 = vadd.f32 %v4225_v8, %v1206_v40 }
 0x29c   : > { %v1484_v58 = vpop.f32.mrf.mxu2 }
 0x29d   : > { %v1485_v35 = vadd.f32 %v1484_v58, %v1471_v6  ;;  %v1533_v55 = vpack.c.bf16 %v1531_v45, %v1529_v43  ;;  %v1532_v0 = vmax.f32 %v1220_v62, 0.0 }
 0x29e   : > { %v1524_v30 = vpop.f32.mrf.mxu0  ;;  %v1498_v36 = vpop.f32.mrf.mxu3 }
 0x29f   : > { %v1537_v49 = vmax.f32 %v1485_v35, 0.0  ;;  %v1499_v42 = vadd.f32 %v1498_v36, %v1259_v28  ;;  %v1534_v3 = vpack.c.bf16 %v1532_v0, %v1530_v2 }
 0x2a1   : > { %v1539_v29 = vpack.c.bf16 %v1537_v49, %v1535_v23 }
 0x2a3   : > { %1778 = vmatmul.bf16.vlgmr.msra.gmra.mxu1 %v1539_v29  ;;  %1806 = vmatmul.bf16.vlgmr.msrb.gmra.mxu0 %v1539_v29 }
 0x2a4   : > { %v1510_v31 = vpop.f32.mrf.mxu2 }
 0x2a5   : > { %v1511_v41 = vadd.f32 %v1510_v31, %v1497_v34 }
 0x2a6   : > { %v1526_v53 = vpop.f32.mrf.mxu0 }
 0x2a7   : > { %v1525_v46 = vadd.f32 %v1524_v30, %v1511_v41 }
 0x2a9   : > { %v1536_v57 = vmax.f32 %v1525_v46, 0.0 }
 0x2ac   : > { %v1512_v22 = vpop.f32.mrf.mxu2 }
 0x2ad   : > { %v1513_v52 = vadd.f32 %v1512_v22, %v1499_v42 }
 0x2af   : > { %v1527_v54 = vadd.f32 %v1526_v53, %v1513_v52 }
 0x2b1   : > { %v1538_v33 = vmax.f32 %v1527_v54, 0.0 }
 0x2b3   : > { %v1540_v16 = vpack.c.bf16 %v1538_v33, %v1536_v57  ;;  %1994 = vmatmul.bf16.vlgmr.msrb.gmra.mxu1 %v1533_v55  ;;  %2022 = vmatmul.bf16.vlgmr.msra.gmra.mxu0 %v1533_v55 }
 0x2b5   : > { %2721 = vmatmul.msk.bf16.vlgmr.msra.gmra.mxu3 %vm1759_vm14, %v1540_v16  ;;  %2722 = vmatmul.msk.bf16.vlgmr.msrb.gmra.mxu2 %vm1759_vm14, %v1540_v16 }
 0x2c5   : > { %2008 = vmatmul.bf16.vlgmr.msrb.gmra.mxu3 %v1534_v3  ;;  %2036 = vmatmul.bf16.vlgmr.msra.gmra.mxu2 %v1534_v3 }
 0x320   : > { %v1779_v7 = vpop.f32.mrf.mxu1  ;;  %v1807_v9 = vpop.f32.mrf.mxu0 }
 0x328   : > { %v1781_v13 = vpop.f32.mrf.mxu1  ;;  %v1809_v14 = vpop.f32.mrf.mxu0 }
 0x330   : > { %v1995_v4 = vpop.f32.mrf.mxu1  ;;  %v2023_v25 = vpop.f32.mrf.mxu0 }
 0x338   : > { %v1793_v10 = vpop.f32.mrf.mxu3  ;;  %v1821_v11 = vpop.f32.mrf.mxu2 }
 0x339   : > { %v1794_v59 = vadd.f32 %v1793_v10, %v1779_v7  ;;  %v1822_v18 = vadd.f32 %v1821_v11, %v1807_v9  ;;  %v1997_v44 = vpop.f32.mrf.mxu1  ;;  %v2025_v48 = vpop.f32.mrf.mxu0 }
 0x33b   : > { %v1996_v8 = vadd.f32 %v1995_v4, %v1794_v59  ;;  %v2024_v47 = vadd.f32 %v2023_v25, %v1822_v18 }
 0x340   : > { %v1795_v15 = vpop.f32.mrf.mxu3  ;;  %v1823_v17 = vpop.f32.mrf.mxu2 }
 0x341   : > { %v1796_v20 = vadd.f32 %v1795_v15, %v1781_v13  ;;  %v1824_v35 = vadd.f32 %v1823_v17, %v1809_v14 }
 0x343   : > { %v1998_v23 = vadd.f32 %v1997_v44, %v1796_v20  ;;  %v2026_v49 = vadd.f32 %v2025_v48, %v1824_v35 }
 0x348   : > { %v2009_v6 = vpop.f32.mrf.mxu3  ;;  %v2037_v50 = vpop.f32.mrf.mxu2 }
 0x349   : > { %v2010_v58 = vadd.f32 %v2009_v6, %v1996_v8  ;;  %v2038_v60 = vadd.f32 %v2037_v50, %v2024_v47 }
 0x34b   : > { %v2048_v38 = vadd.f32 %v2044_v27, %v2010_v58  ;;  %v2049_v21 = vadd.f32 %v2045_v12, %v2038_v60 }
 0x34d   : > { %2052 = vst [vmem:[#allocation8] sm:$0xff] %v2048_v38 }
 0x34e   : > { %2054 = vst.msk [vmem:[#allocation8 + $0x8] sm:$0xff] %vm2053_vm15, %v2049_v21 }
 0x350   : > { %v2011_v51 = vpop.f32.mrf.mxu3  ;;  %v2039_v1 = vpop.f32.mrf.mxu2 }
 0x351   : > { %v2012_v24 = vadd.f32 %v2011_v51, %v1998_v23  ;;  %v2040_v26 = vadd.f32 %v2039_v1, %v2026_v49 }
 0x353   : > { %v2050_v28 = vadd.f32 %v2044_v27, %v2012_v24  ;;  %v2051_v29 = vadd.f32 %v2045_v12, %v2040_v26 }
 0x355   : > { %2055 = vst [vmem:[#allocation8 + $0x10] sm:$0xff] %v2050_v28 }
 0x356   : > { %2056 = vst.msk [vmem:[#allocation8 + $0x18] sm:$0xff] %vm2053_vm15, %v2051_v29 }
 0x357 PF: > { %p3045_p9 = scmp.eq.s32.totalorder %s2160_s0, 1  ;;  %s2074_s16 = sshll.u32 %s4299_s11, 4  ;;  %s2075_s16 = int_to_ptr.hbm [resolvable:$true] %s2074_s16 }
 0x358   : > { %s3176_s17 = smov [#allocation8]   ;;  %s3177_s18 = smov 256  }
 0x359   : > { %s2072_s25 = sshll.u32 %s3176_s17, 4  ;;  %s3178_s26 = smov 16   ;;  %s2073_s25 = int_to_ptr.vmem [resolvable:$true] %s2072_s25 }
 0x35a   : > { %3032 = dma.vmem_to_hbm [thread:$0]  (%p3045_p9), %s2073_s25, 512, %s2075_s16, [#allocation7], %s3177_s18, %s3177_s18, %s3178_s26  }
 0x35b PF: > { %p3046_p10 = scmp.ge.s32.totalorder %s3171_s21, 2  ;;  %p3047_p11 = scmp.eq.s32.totalorder %s2161_s22, 1 }
 0x35d   : > { %p3040_p12 = pnand %p3047_p11, %p3046_p10 }
 0x35f   : > { %p3041_p13 = pneg %p3040_p12 }
 0x361   : > { %3158 = dma.done.wait (%p3041_p13), [#allocation7], 512  }
 0x362   : > { %3160 = vsyncadd (%p3041_p13), [#allocation7], 4294966784  ;;  %s26_s21 = sadd.s32 1, %s3171_s21   ;;  %s4303_s19 = smov %s3167_s20 }
 0x363   : > { %p23_p0 = scmp.ge.s32.totalorder %s26_s21, 4   ;;  %s4304_s20 = smov %s4306_s23 }
 0x365   :  { %25 = sbr.rel (!%p23_p0) target bundleno = 6 (0x6), region = 116 }
 0x36a   :  { %2096 = vsyncpa [#allocation6], 1 }
 0x36b   :  { %2098 = vsyncpa [#allocation6 + $0x1], 1 }
 0x36c   :  { %2099 = vsyncpa [#allocation7], 1 }
 0x36d   :  { %2101 = vsyncpa [#allocation7 + $0x1], 1 }

</bundles_post_ra>
